<compile_context>
chip_gen: v6e
topology: v6e:2x2x1
jax: 0.10.0
libtpu: 0.0.40
codegen_flags: <defaults>
</compile_context>

<pallas_src>
import functools

import jax
import jax.numpy as jnp
from jax import lax
from jax.experimental import pallas as pl
from jax.experimental.pallas import tpu as pltpu

LN_EPS = 1e-5          # PyTorch nn.LayerNorm default
USE_TANH_GELU = False  # exact erf GELU matches nn.GELU(); flip only if a bundle dump
                       # shows the VALU (not MXU) is the binding slot on v6e/v7x.


def _gelu(x):
    if USE_TANH_GELU:
        return jax.nn.gelu(x, approximate=True)
    return 0.5 * x * (1.0 + lax.erf(x * 0.7071067811865476))


def _silu(x):
    return x * jax.nn.sigmoid(x)


def ffn_kernel(x_ref, emb_ref, w1_ref, b1_ref, w2_ref, b2_ref,
               gamma_ref, beta_ref, wo_ref, bo_ref, we_ref, be_ref, o_ref):
    """One grid step = one (feature half, batch block); x_ref is (Bblk, T, D)."""
    Bblk, T, D = x_ref.shape
    R = Bblk * T

    x3 = x_ref[...]                                       # (Bblk, T, D), f32
    x2 = x3.reshape(R, D)

    # --- emb -> (scale, shift); per batch element, broadcast over T ---------
    e = _silu(emb_ref[...].reshape(Bblk, -1))             # (Bblk, E), f32
    eo = jnp.dot(e.astype(jnp.bfloat16), we_ref[...],
                 preferred_element_type=jnp.float32) + be_ref[...]   # (Bblk, 2D)
    scale = eo[:, :D].reshape(Bblk, 1, D)
    shift = eo[:, D:].reshape(Bblk, 1, D)

    # --- FFN main path: linear1 -> GELU -> linear2 (bf16 MXU, f32 acc) ------
    h = jnp.dot(x2.astype(jnp.bfloat16), w1_ref[...],
                preferred_element_type=jnp.float32) + b1_ref[...]    # (R, F)
    h = _gelu(h)                                          # dropout = identity (eval)
    y = jnp.dot(h.astype(jnp.bfloat16), w2_ref[...],
                preferred_element_type=jnp.float32) + b2_ref[...]    # (R, D)
    y3 = y.reshape(Bblk, T, D)

    # --- StylizationBlock: LayerNorm (single-pass stats) -> affine -> SiLU -> Linear
    mu = jnp.mean(y3, axis=-1, keepdims=True)
    ms = jnp.mean(y3 * y3, axis=-1, keepdims=True)
    yn = (y3 - mu) * lax.rsqrt(ms - mu * mu + LN_EPS)
    yn = yn * gamma_ref[...] + beta_ref[...]

    h2 = _silu(yn * (1.0 + scale) + shift).reshape(R, D)
    h2 = jnp.dot(h2.astype(jnp.bfloat16), wo_ref[...],
                 preferred_element_type=jnp.float32) + bo_ref[...]   # (R, D)

    o_ref[...] = (x3 + h2.reshape(Bblk, T, D)).astype(o_ref.dtype)   # residual


# ----------------------------- wrapper helpers -------------------------------

def _tpu_vmem_capacity_bytes():
    """Per-TensorCore VMEM; fall back to the smallest current generation (v7x 64 MiB)."""
    try:
        return int(pltpu.get_tpu_info().vmem_capacity_bytes)
    except Exception:
        return 64 * 2**20


def _step_vmem_bytes(bblk, T, D, F, E):
    rows = bblk * T
    io = 2 * (2 * rows * D * 4)                     # x + out blocks, double-buffered f32
    wts = (D * F + F * D + D * D + E * 2 * D) * 2   # bf16 weights, single-buffered
    small = (F + 8 * D) * 4 + 2 * bblk * E * 4      # biases / LN affine / emb block
    interm = rows * (3 * F + 8 * D) * 4             # f32 GELU act (+bf16 copy), y, yn, h2
    return io + wts + small + interm


def _pick_batch_block(B, T, D, F, E, vmem_budget, target_rows=2048):
    """Largest divisor of B giving ~target_rows MXU rows per step within VMEM budget."""
    best = 1
    for cand in range(1, B + 1):
        if B % cand:
            continue
        if cand * T > max(T, target_rows):
            continue
        if _step_vmem_bytes(cand, T, D, F, E) > vmem_budget:
            continue
        best = cand
    return best


def _const_spec(shape, single_buffer):
    """BlockSpec for an operand whose block index never changes (weights/biases)."""
    def index_map(h, b):
        return (0,) * len(shape)
    if single_buffer and hasattr(pl, "Buffered"):
        try:
            return pl.BlockSpec(shape, index_map, pipeline_mode=pl.Buffered(1))
        except TypeError:       # older BlockSpec without pipeline_mode kwarg
            pass
    return pl.BlockSpec(shape, index_map)


def ffn_forward(x, emb, params, *, single_buffer_weights=True):
    B, T, two_d = x.shape
    D, F = params["w1"].shape
    E = params["we"].shape[0]
    assert two_d == 2 * D
    if D % 128 != 0:
        raise ValueError("latent_dim must be a multiple of 128 so each feature half "
                         "is a lane-aligned block (Mosaic (8,128) tiling rule).")

    vmem_cap = _tpu_vmem_capacity_bytes()
    # Size the batch block against ~60% of VMEM (headroom for compiler scratch/spills).
    bblk = _pick_batch_block(B, T, D, F, E, vmem_budget=int(0.6 * vmem_cap))
    step_bytes = _step_vmem_bytes(bblk, T, D, F, E)
    vmem_limit = int(min(0.85 * vmem_cap, max(32 * 2**20, 3 * step_bytes)))

    # (feature half, batch block): >=2 parallel steps, so both v7x TCs get work.
    grid = (2, B // bblk)

    # Pre-cast MXU weights to bf16 once (f32 accumulation happens in the dots).
    w1 = params["w1"].astype(jnp.bfloat16)
    w2 = params["w2"].astype(jnp.bfloat16)
    wo = params["wo"].astype(jnp.bfloat16)
    we = params["we"].astype(jnp.bfloat16)

    emb3 = emb.reshape(B, 1, E)  # last-2 block dims full extents -> always legal

    # Advisory cost estimate for XLA scheduling around the custom call.
    rows_total = 2 * B * T
    flops = 2 * rows_total * (D * F + F * D + D * D) + 2 * 2 * B * E * 2 * D
    transcendentals = rows_total * (F + 2 * D) + 2 * B * E
    bytes_accessed = (2 * B * T * two_d * 4
                      + (D * F + F * D + D * D + E * 2 * D) * 2
                      + (F + 8 * D) * 4 + 2 * B * E * 4)

    out = pl.pallas_call(
        ffn_kernel,
        out_shape=jax.ShapeDtypeStruct((B, T, two_d), x.dtype),
        grid=grid,
        in_specs=[
            pl.BlockSpec((bblk, T, D), lambda h, b: (b, 0, h)),    # x (one feature half)
            pl.BlockSpec((bblk, 1, E), lambda h, b: (b, 0, 0)),    # emb
            _const_spec((D, F), single_buffer_weights),            # w1 (bf16)
            _const_spec((1, F), single_buffer_weights),            # b1
            _const_spec((F, D), single_buffer_weights),            # w2 (bf16)
            _const_spec((1, D), single_buffer_weights),            # b2
            _const_spec((1, D), single_buffer_weights),            # ln gamma
            _const_spec((1, D), single_buffer_weights),            # ln beta
            _const_spec((D, D), single_buffer_weights),            # stylization out w (bf16)
            _const_spec((1, D), single_buffer_weights),            # stylization out b
            _const_spec((E, 2 * D), single_buffer_weights),        # emb linear w (bf16)
            _const_spec((1, 2 * D), single_buffer_weights),        # emb linear b
        ],
        out_specs=pl.BlockSpec((bblk, T, D), lambda h, b: (b, 0, h)),
        compiler_params=pltpu.CompilerParams(
            dimension_semantics=("parallel", "parallel"),
            vmem_limit_bytes=vmem_limit),
        cost_estimate=pl.CostEstimate(
            flops=int(flops),
            transcendentals=int(transcendentals),
            bytes_accessed=int(bytes_accessed)),
    )(x, emb3, w1, params["b1"], w2, params["b2"],
      params["gamma"], params["beta"], wo, params["bo"],
      we, params["be"])
    return out


@functools.partial(jax.jit, static_argnums=(3,))
def _ffn_forward_jit(x, emb, params, single_buffer_weights):
    return ffn_forward(x, emb, params, single_buffer_weights=single_buffer_weights)


def decoder_layer_forward(x, emb, params):
    # TODO(synk): ca_block_cfg=None -> ca_block is None; only the FFN branch runs.
    try:
        return _ffn_forward_jit(x, emb, params, True)
    except Exception:
        # Fallback for jax builds where single-buffered pipeline_mode is unsupported.
        return _ffn_forward_jit(x, emb, params, False)


# --------------------------- pure-JAX reference ------------------------------

def ffn_reference(x, emb, params):
    """Pure-JAX f32 reference for the same forward pass."""
    D = params["w1"].shape[0]
    emb_out = _silu(emb) @ params["we"] + params["be"]
    scale = emb_out[:, :D][:, None, :]
    shift = emb_out[:, D:][:, None, :]

    def branch(xh):
        h = _gelu(xh @ params["w1"] + params["b1"])
        y = h @ params["w2"] + params["b2"]
        mu = y.mean(-1, keepdims=True)
        var = ((y - mu) ** 2).mean(-1, keepdims=True)
        yn = (y - mu) / jnp.sqrt(var + LN_EPS) * params["gamma"] + params["beta"]
        h2 = yn * (1.0 + scale) + shift
        h2 = _silu(h2) @ params["wo"] + params["bo"]
        return xh + h2

    return jnp.concatenate([branch(x[..., :D]), branch(x[..., D:])], axis=-1)


def make_params(key, latent_dim, ffn_dim, time_embed_dim):
    ks = jax.random.split(key, 8)
    s = 0.05
    return {
        # linear1: latent_dim -> ffn_dim   (stored (in, out))
        "w1": s * jax.random.normal(ks[0], (latent_dim, ffn_dim), jnp.float32),
        "b1": s * jax.random.normal(ks[1], (1, ffn_dim), jnp.float32),
        # linear2: ffn_dim -> latent_dim   (zero_module in original; nonzero here)
        "w2": s * jax.random.normal(ks[2], (ffn_dim, latent_dim), jnp.float32),
        "b2": s * jax.random.normal(ks[3], (1, latent_dim), jnp.float32),
        # StylizationBlock.norm (LayerNorm affine)
        "gamma": jnp.ones((1, latent_dim), jnp.float32),
        "beta": jnp.zeros((1, latent_dim), jnp.float32),
        # StylizationBlock.emb_layers linear: time_embed_dim -> 2*latent_dim
        "we": s * jax.random.normal(ks[4], (time_embed_dim, 2 * latent_dim), jnp.float32),
        "be": s * jax.random.normal(ks[5], (1, 2 * latent_dim), jnp.float32),
        # StylizationBlock.out_layers linear: latent_dim -> latent_dim
        # (zero_module in original; nonzero here)
        "wo": s * jax.random.normal(ks[6], (latent_dim, latent_dim), jnp.float32),
        "bo": s * jax.random.normal(ks[7], (1, latent_dim), jnp.float32),
    }


if __name__ == "__main__":
    B, T = 2, 8
    latent_dim, ffn_dim, time_embed_dim = 128, 256, 64

    key = jax.random.PRNGKey(0)
    kx, ke, kp = jax.random.split(key, 3)
    x = jax.random.normal(kx, (B, T, 2 * latent_dim), jnp.float32)
    emb = jax.random.normal(ke, (B, time_embed_dim), jnp.float32)
    params = make_params(kp, latent_dim, ffn_dim, time_embed_dim)

    y = decoder_layer_forward(x, emb, params)
    y = jax.block_until_ready(y)

    y_ref = ffn_reference(x, emb, params)
    assert y.shape == (B, T, 2 * latent_dim)
    # bf16 matmul operands with f32 accumulation -> relaxed tolerance vs f32 ref.
    assert jnp.allclose(y, y_ref, rtol=2e-2, atol=2e-2), "mismatch vs reference"

    print("KERNEL_OK")
</pallas_src>

<mosaic_0001>
module attributes {stable_mosaic.version = 11 : i64} {
  func.func @ffn_kernel(%arg0: i32, %arg1: i32, %arg2: memref<2x8x128xf32, #tpu.memory_space<vmem>>, %arg3: memref<2x1x64xf32, #tpu.memory_space<vmem>>, %arg4: memref<128x256xbf16, #tpu.memory_space<vmem>>, %arg5: memref<1x256xf32, #tpu.memory_space<vmem>>, %arg6: memref<256x128xbf16, #tpu.memory_space<vmem>>, %arg7: memref<1x128xf32, #tpu.memory_space<vmem>>, %arg8: memref<1x128xf32, #tpu.memory_space<vmem>>, %arg9: memref<1x128xf32, #tpu.memory_space<vmem>>, %arg10: memref<128x128xbf16, #tpu.memory_space<vmem>>, %arg11: memref<1x128xf32, #tpu.memory_space<vmem>>, %arg12: memref<64x256xbf16, #tpu.memory_space<vmem>>, %arg13: memref<1x256xf32, #tpu.memory_space<vmem>>, %arg14: memref<2x8x128xf32, #tpu.memory_space<vmem>>) attributes {dimension_semantics = [#tpu.dimension_semantics<parallel>, #tpu.dimension_semantics<parallel>], iteration_bounds = array<i64: 2, 1>, scalar_prefetch = 0 : i64, scratch_operands = 0 : i64, tpu.core_type = #tpu.core_type<tc>, window_params = [{transform_indices = @transform_0, window_bounds = array<i64: 2, 8, 128>}, {transform_indices = @transform_1, window_bounds = array<i64: 2, 1, 64>}, {pipeline_mode = #tpu.pipeline_mode<synchronous>, transform_indices = @transform_2, window_bounds = array<i64: 128, 256>}, {pipeline_mode = #tpu.pipeline_mode<synchronous>, transform_indices = @transform_3, window_bounds = array<i64: 1, 256>}, {pipeline_mode = #tpu.pipeline_mode<synchronous>, transform_indices = @transform_4, window_bounds = array<i64: 256, 128>}, {pipeline_mode = #tpu.pipeline_mode<synchronous>, transform_indices = @transform_5, window_bounds = array<i64: 1, 128>}, {pipeline_mode = #tpu.pipeline_mode<synchronous>, transform_indices = @transform_6, window_bounds = array<i64: 1, 128>}, {pipeline_mode = #tpu.pipeline_mode<synchronous>, transform_indices = @transform_7, window_bounds = array<i64: 1, 128>}, {pipeline_mode = #tpu.pipeline_mode<synchronous>, transform_indices = @transform_8, window_bounds = array<i64: 128, 128>}, {pipeline_mode = #tpu.pipeline_mode<synchronous>, transform_indices = @transform_9, window_bounds = array<i64: 1, 128>}, {pipeline_mode = #tpu.pipeline_mode<synchronous>, transform_indices = @transform_10, window_bounds = array<i64: 64, 256>}, {pipeline_mode = #tpu.pipeline_mode<synchronous>, transform_indices = @transform_11, window_bounds = array<i64: 1, 256>}, {transform_indices = @transform_12, window_bounds = array<i64: 2, 8, 128>}]} {
    %c0 = arith.constant 0 : index
    %c0_0 = arith.constant 0 : index
    %c0_1 = arith.constant 0 : index
    %0 = vector.load %arg2[%c0, %c0_0, %c0_1] : memref<2x8x128xf32, #tpu.memory_space<vmem>>, vector<2x8x128xf32>
    %1 = vector.shape_cast %0 : vector<2x8x128xf32> to vector<16x128xf32>
    %c0_2 = arith.constant 0 : index
    %c0_3 = arith.constant 0 : index
    %c0_4 = arith.constant 0 : index
    %2 = vector.load %arg3[%c0_2, %c0_3, %c0_4] : memref<2x1x64xf32, #tpu.memory_space<vmem>>, vector<2x1x64xf32>
    %3 = vector.shape_cast %2 : vector<2x1x64xf32> to vector<2x64xf32>
    %4 = arith.negf %3 : vector<2x64xf32>
    %5 = math.exp %4 : vector<2x64xf32>
    %cst = arith.constant 1.000000e+00 : f32
    %6 = vector.broadcast %cst : f32 to vector<2x64xf32>
    %7 = arith.addf %6, %5 : vector<2x64xf32>
    %8 = arith.divf %6, %7 : vector<2x64xf32>
    %9 = arith.mulf %3, %8 : vector<2x64xf32>
    %10 = arith.truncf %9 : vector<2x64xf32> to vector<2x64xbf16>
    %c0_5 = arith.constant 0 : index
    %c0_6 = arith.constant 0 : index
    %11 = vector.load %arg12[%c0_5, %c0_6] : memref<64x256xbf16, #tpu.memory_space<vmem>>, vector<64x256xbf16>
    %cst_7 = arith.constant dense<0.000000e+00> : vector<2x256xf32>
    %12 = tpu.matmul %10, %11, %cst_7 {dimension_numbers = #tpu.dot_dimension_numbers<[1], [0], [0], [1], [0, 0, 1, 1], [], []>} : vector<2x64xbf16>, vector<64x256xbf16>, vector<2x256xf32> -> vector<2x256xf32>
    %c0_8 = arith.constant 0 : index
    %c0_9 = arith.constant 0 : index
    %13 = vector.load %arg13[%c0_8, %c0_9] : memref<1x256xf32, #tpu.memory_space<vmem>>, vector<1x256xf32>
    %14 = vector.broadcast %13 : vector<1x256xf32> to vector<2x256xf32>
    %15 = arith.addf %12, %14 : vector<2x256xf32>
    %16 = vector.extract_strided_slice %15 {offsets = [0, 0], sizes = [2, 128], strides = [1, 1]} : vector<2x256xf32> to vector<2x128xf32>
    %17 = vector.shape_cast %16 : vector<2x128xf32> to vector<2x1x128xf32>
    %18 = vector.extract_strided_slice %15 {offsets = [0, 128], sizes = [2, 128], strides = [1, 1]} : vector<2x256xf32> to vector<2x128xf32>
    %19 = vector.shape_cast %18 : vector<2x128xf32> to vector<2x1x128xf32>
    %20 = arith.truncf %1 : vector<16x128xf32> to vector<16x128xbf16>
    %c0_10 = arith.constant 0 : index
    %c0_11 = arith.constant 0 : index
    %21 = vector.load %arg4[%c0_10, %c0_11] : memref<128x256xbf16, #tpu.memory_space<vmem>>, vector<128x256xbf16>
    %cst_12 = arith.constant dense<0.000000e+00> : vector<16x256xf32>
    %22 = tpu.matmul %20, %21, %cst_12 {dimension_numbers = #tpu.dot_dimension_numbers<[1], [0], [0], [1], [0, 0, 1, 1], [], []>} : vector<16x128xbf16>, vector<128x256xbf16>, vector<16x256xf32> -> vector<16x256xf32>
    %c0_13 = arith.constant 0 : index
    %c0_14 = arith.constant 0 : index
    %23 = vector.load %arg5[%c0_13, %c0_14] : memref<1x256xf32, #tpu.memory_space<vmem>>, vector<1x256xf32>
    %24 = vector.broadcast %23 : vector<1x256xf32> to vector<16x256xf32>
    %25 = arith.addf %22, %24 : vector<16x256xf32>
    %cst_15 = arith.constant 5.000000e-01 : f32
    %26 = vector.broadcast %cst_15 : f32 to vector<16x256xf32>
    %27 = arith.mulf %26, %25 : vector<16x256xf32>
    %cst_16 = arith.constant 0.707106769 : f32
    %28 = vector.broadcast %cst_16 : f32 to vector<16x256xf32>
    %29 = arith.mulf %25, %28 : vector<16x256xf32>
    %30 = math.erf %29 : vector<16x256xf32>
    %cst_17 = arith.constant 1.000000e+00 : f32
    %31 = vector.broadcast %cst_17 : f32 to vector<16x256xf32>
    %32 = arith.addf %31, %30 : vector<16x256xf32>
    %33 = arith.mulf %27, %32 : vector<16x256xf32>
    %34 = arith.truncf %33 : vector<16x256xf32> to vector<16x256xbf16>
    %c0_18 = arith.constant 0 : index
    %c0_19 = arith.constant 0 : index
    %35 = vector.load %arg6[%c0_18, %c0_19] : memref<256x128xbf16, #tpu.memory_space<vmem>>, vector<256x128xbf16>
    %cst_20 = arith.constant dense<0.000000e+00> : vector<16x128xf32>
    %36 = tpu.matmul %34, %35, %cst_20 {dimension_numbers = #tpu.dot_dimension_numbers<[1], [0], [0], [1], [0, 0, 1, 1], [], []>} : vector<16x256xbf16>, vector<256x128xbf16>, vector<16x128xf32> -> vector<16x128xf32>
    %c0_21 = arith.constant 0 : index
    %c0_22 = arith.constant 0 : index
    %37 = vector.load %arg7[%c0_21, %c0_22] : memref<1x128xf32, #tpu.memory_space<vmem>>, vector<1x128xf32>
    %38 = vector.broadcast %37 : vector<1x128xf32> to vector<16x128xf32>
    %39 = arith.addf %36, %38 : vector<16x128xf32>
    %40 = vector.shape_cast %39 : vector<16x128xf32> to vector<2x8x128xf32>
    %cst_23 = arith.constant dense<0.000000e+00> : vector<2x8xf32>
    %41 = vector.multi_reduction <add>, %40, %cst_23 [2] : vector<2x8x128xf32> to vector<2x8xf32>
    %42 = vector.shape_cast %41 : vector<2x8xf32> to vector<2x8x1xf32>
    %cst_24 = arith.constant 1.280000e+02 : f32
    %43 = vector.broadcast %cst_24 : f32 to vector<2x8x1xf32>
    %44 = arith.divf %42, %43 : vector<2x8x1xf32>
    %45 = arith.mulf %40, %40 : vector<2x8x128xf32>
    %cst_25 = arith.constant dense<0.000000e+00> : vector<2x8xf32>
    %46 = vector.multi_reduction <add>, %45, %cst_25 [2] : vector<2x8x128xf32> to vector<2x8xf32>
    %47 = vector.shape_cast %46 : vector<2x8xf32> to vector<2x8x1xf32>
    %cst_26 = arith.constant 1.280000e+02 : f32
    %48 = vector.broadcast %cst_26 : f32 to vector<2x8x1xf32>
    %49 = arith.divf %47, %48 : vector<2x8x1xf32>
    %50 = vector.broadcast %44 : vector<2x8x1xf32> to vector<2x8x128xf32>
    %51 = arith.subf %40, %50 : vector<2x8x128xf32>
    %52 = arith.mulf %44, %44 : vector<2x8x1xf32>
    %53 = arith.subf %49, %52 : vector<2x8x1xf32>
    %cst_27 = arith.constant 9.99999974E-6 : f32
    %54 = vector.broadcast %cst_27 : f32 to vector<2x8x1xf32>
    %55 = arith.addf %53, %54 : vector<2x8x1xf32>
    %56 = math.rsqrt %55 : vector<2x8x1xf32>
    %57 = vector.broadcast %56 : vector<2x8x1xf32> to vector<2x8x128xf32>
    %58 = arith.mulf %51, %57 : vector<2x8x128xf32>
    %c0_28 = arith.constant 0 : index
    %c0_29 = arith.constant 0 : index
    %59 = vector.load %arg8[%c0_28, %c0_29] : memref<1x128xf32, #tpu.memory_space<vmem>>, vector<1x128xf32>
    %60 = vector.shape_cast %59 : vector<1x128xf32> to vector<1x1x128xf32>
    %61 = vector.broadcast %60 : vector<1x1x128xf32> to vector<2x8x128xf32>
    %62 = arith.mulf %58, %61 : vector<2x8x128xf32>
    %c0_30 = arith.constant 0 : index
    %c0_31 = arith.constant 0 : index
    %63 = vector.load %arg9[%c0_30, %c0_31] : memref<1x128xf32, #tpu.memory_space<vmem>>, vector<1x128xf32>
    %64 = vector.shape_cast %63 : vector<1x128xf32> to vector<1x1x128xf32>
    %65 = vector.broadcast %64 : vector<1x1x128xf32> to vector<2x8x128xf32>
    %66 = arith.addf %62, %65 : vector<2x8x128xf32>
    %cst_32 = arith.constant 1.000000e+00 : f32
    %67 = vector.broadcast %cst_32 : f32 to vector<2x1x128xf32>
    %68 = arith.addf %67, %17 : vector<2x1x128xf32>
    %69 = vector.broadcast %68 : vector<2x1x128xf32> to vector<2x8x128xf32>
    %70 = arith.mulf %66, %69 : vector<2x8x128xf32>
    %71 = vector.broadcast %19 : vector<2x1x128xf32> to vector<2x8x128xf32>
    %72 = arith.addf %70, %71 : vector<2x8x128xf32>
    %73 = arith.negf %72 : vector<2x8x128xf32>
    %74 = math.exp %73 : vector<2x8x128xf32>
    %cst_33 = arith.constant 1.000000e+00 : f32
    %75 = vector.broadcast %cst_33 : f32 to vector<2x8x128xf32>
    %76 = arith.addf %75, %74 : vector<2x8x128xf32>
    %77 = arith.divf %75, %76 : vector<2x8x128xf32>
    %78 = arith.mulf %72, %77 : vector<2x8x128xf32>
    %79 = vector.shape_cast %78 : vector<2x8x128xf32> to vector<16x128xf32>
    %80 = arith.truncf %79 : vector<16x128xf32> to vector<16x128xbf16>
    %c0_34 = arith.constant 0 : index
    %c0_35 = arith.constant 0 : index
    %81 = vector.load %arg10[%c0_34, %c0_35] : memref<128x128xbf16, #tpu.memory_space<vmem>>, vector<128x128xbf16>
    %cst_36 = arith.constant dense<0.000000e+00> : vector<16x128xf32>
    %82 = tpu.matmul %80, %81, %cst_36 {dimension_numbers = #tpu.dot_dimension_numbers<[1], [0], [0], [1], [0, 0, 1, 1], [], []>} : vector<16x128xbf16>, vector<128x128xbf16>, vector<16x128xf32> -> vector<16x128xf32>
    %c0_37 = arith.constant 0 : index
    %c0_38 = arith.constant 0 : index
    %83 = vector.load %arg11[%c0_37, %c0_38] : memref<1x128xf32, #tpu.memory_space<vmem>>, vector<1x128xf32>
    %84 = vector.broadcast %83 : vector<1x128xf32> to vector<16x128xf32>
    %85 = arith.addf %82, %84 : vector<16x128xf32>
    %86 = vector.shape_cast %85 : vector<16x128xf32> to vector<2x8x128xf32>
    %87 = arith.addf %0, %86 : vector<2x8x128xf32>
    %c0_39 = arith.constant 0 : index
    %c0_40 = arith.constant 0 : index
    %c0_41 = arith.constant 0 : index
    %88 = vector.load %arg14[%c0_39, %c0_40, %c0_41] : memref<2x8x128xf32, #tpu.memory_space<vmem>>, vector<2x8x128xf32>
    tpu.vector_store %arg14[%c0_39, %c0_40, %c0_41], %87 {strides = array<i32>} : memref<2x8x128xf32, #tpu.memory_space<vmem>>, vector<2x8x128xf32>,
    return
  }
  func.func @transform_0(%arg0: i32, %arg1: i32) -> (i32, i32, i32) {
    %c0_i32 = arith.constant 0 : i32
    %c0_i32_0 = arith.constant 0 : i32
    return %arg1, %c0_i32, %arg0 : i32, i32, i32
  }
  func.func @transform_1(%arg0: i32, %arg1: i32) -> (i32, i32, i32) {
    %c0_i32 = arith.constant 0 : i32
    %c0_i32_0 = arith.constant 0 : i32
    %c0_i32_1 = arith.constant 0 : i32
    return %arg1, %c0_i32, %c0_i32_0 : i32, i32, i32
  }
  func.func @transform_2(%arg0: i32, %arg1: i32) -> (i32, i32) {
    %c0_i32 = arith.constant 0 : i32
    %c0_i32_0 = arith.constant 0 : i32
    %c0_i32_1 = arith.constant 0 : i32
    return %c0_i32, %c0_i32_0 : i32, i32
  }
  func.func @transform_3(%arg0: i32, %arg1: i32) -> (i32, i32) {
    %c0_i32 = arith.constant 0 : i32
    %c0_i32_0 = arith.constant 0 : i32
    %c0_i32_1 = arith.constant 0 : i32
    return %c0_i32, %c0_i32_0 : i32, i32
  }
  func.func @transform_4(%arg0: i32, %arg1: i32) -> (i32, i32) {
    %c0_i32 = arith.constant 0 : i32
    %c0_i32_0 = arith.constant 0 : i32
    %c0_i32_1 = arith.constant 0 : i32
    return %c0_i32, %c0_i32_0 : i32, i32
  }
  func.func @transform_5(%arg0: i32, %arg1: i32) -> (i32, i32) {
    %c0_i32 = arith.constant 0 : i32
    %c0_i32_0 = arith.constant 0 : i32
    %c0_i32_1 = arith.constant 0 : i32
    return %c0_i32, %c0_i32_0 : i32, i32
  }
  func.func @transform_6(%arg0: i32, %arg1: i32) -> (i32, i32) {
    %c0_i32 = arith.constant 0 : i32
    %c0_i32_0 = arith.constant 0 : i32
    %c0_i32_1 = arith.constant 0 : i32
    return %c0_i32, %c0_i32_0 : i32, i32
  }
  func.func @transform_7(%arg0: i32, %arg1: i32) -> (i32, i32) {
    %c0_i32 = arith.constant 0 : i32
    %c0_i32_0 = arith.constant 0 : i32
    %c0_i32_1 = arith.constant 0 : i32
    return %c0_i32, %c0_i32_0 : i32, i32
  }
  func.func @transform_8(%arg0: i32, %arg1: i32) -> (i32, i32) {
    %c0_i32 = arith.constant 0 : i32
    %c0_i32_0 = arith.constant 0 : i32
    %c0_i32_1 = arith.constant 0 : i32
    return %c0_i32, %c0_i32_0 : i32, i32
  }
  func.func @transform_9(%arg0: i32, %arg1: i32) -> (i32, i32) {
    %c0_i32 = arith.constant 0 : i32
    %c0_i32_0 = arith.constant 0 : i32
    %c0_i32_1 = arith.constant 0 : i32
    return %c0_i32, %c0_i32_0 : i32, i32
  }
  func.func @transform_10(%arg0: i32, %arg1: i32) -> (i32, i32) {
    %c0_i32 = arith.constant 0 : i32
    %c0_i32_0 = arith.constant 0 : i32
    %c0_i32_1 = arith.constant 0 : i32
    return %c0_i32, %c0_i32_0 : i32, i32
  }
  func.func @transform_11(%arg0: i32, %arg1: i32) -> (i32, i32) {
    %c0_i32 = arith.constant 0 : i32
    %c0_i32_0 = arith.constant 0 : i32
    %c0_i32_1 = arith.constant 0 : i32
    return %c0_i32, %c0_i32_0 : i32, i32
  }
  func.func @transform_12(%arg0: i32, %arg1: i32) -> (i32, i32, i32) {
    %c0_i32 = arith.constant 0 : i32
    %c0_i32_0 = arith.constant 0 : i32
    return %arg1, %c0_i32, %arg0 : i32, i32, i32
  }
}

module attributes {stable_mosaic.version = 11 : i64} {
  func.func @ffn_kernel(%arg0: i32, %arg1: i32, %arg2: memref<2x8x128xf32, #tpu.memory_space<vmem>>, %arg3: memref<2x1x64xf32, #tpu.memory_space<vmem>>, %arg4: memref<128x256xbf16, #tpu.memory_space<vmem>>, %arg5: memref<1x256xf32, #tpu.memory_space<vmem>>, %arg6: memref<256x128xbf16, #tpu.memory_space<vmem>>, %arg7: memref<1x128xf32, #tpu.memory_space<vmem>>, %arg8: memref<1x128xf32, #tpu.memory_space<vmem>>, %arg9: memref<1x128xf32, #tpu.memory_space<vmem>>, %arg10: memref<128x128xbf16, #tpu.memory_space<vmem>>, %arg11: memref<1x128xf32, #tpu.memory_space<vmem>>, %arg12: memref<64x256xbf16, #tpu.memory_space<vmem>>, %arg13: memref<1x256xf32, #tpu.memory_space<vmem>>, %arg14: memref<2x8x128xf32, #tpu.memory_space<vmem>>) attributes {dimension_semantics = [#tpu.dimension_semantics<parallel>, #tpu.dimension_semantics<parallel>], iteration_bounds = array<i64: 2, 1>, scalar_prefetch = 0 : i64, scratch_operands = 0 : i64, tpu.core_type = #tpu.core_type<tc>, window_params = [{transform_indices = @transform_0, window_bounds = array<i64: 2, 8, 128>}, {transform_indices = @transform_1, window_bounds = array<i64: 2, 1, 64>}, {pipeline_mode = #tpu.pipeline_mode<synchronous>, transform_indices = @transform_2, window_bounds = array<i64: 128, 256>}, {pipeline_mode = #tpu.pipeline_mode<synchronous>, transform_indices = @transform_3, window_bounds = array<i64: 1, 256>}, {pipeline_mode = #tpu.pipeline_mode<synchronous>, transform_indices = @transform_4, window_bounds = array<i64: 256, 128>}, {pipeline_mode = #tpu.pipeline_mode<synchronous>, transform_indices = @transform_5, window_bounds = array<i64: 1, 128>}, {pipeline_mode = #tpu.pipeline_mode<synchronous>, transform_indices = @transform_6, window_bounds = array<i64: 1, 128>}, {pipeline_mode = #tpu.pipeline_mode<synchronous>, transform_indices = @transform_7, window_bounds = array<i64: 1, 128>}, {pipeline_mode = #tpu.pipeline_mode<synchronous>, transform_indices = @transform_8, window_bounds = array<i64: 128, 128>}, {pipeline_mode = #tpu.pipeline_mode<synchronous>, transform_indices = @transform_9, window_bounds = array<i64: 1, 128>}, {pipeline_mode = #tpu.pipeline_mode<synchronous>, transform_indices = @transform_10, window_bounds = array<i64: 64, 256>}, {pipeline_mode = #tpu.pipeline_mode<synchronous>, transform_indices = @transform_11, window_bounds = array<i64: 1, 256>}, {transform_indices = @transform_12, window_bounds = array<i64: 2, 8, 128>}]} {
    %c0 = arith.constant 0 : index
    %c0_0 = arith.constant 0 : index
    %c0_1 = arith.constant 0 : index
    %0 = vector.load %arg2[%c0, %c0_0, %c0_1] : memref<2x8x128xf32, #tpu.memory_space<vmem>>, vector<2x8x128xf32>
    %1 = vector.shape_cast %0 : vector<2x8x128xf32> to vector<16x128xf32>
    %c0_2 = arith.constant 0 : index
    %c0_3 = arith.constant 0 : index
    %c0_4 = arith.constant 0 : index
    %2 = vector.load %arg3[%c0_2, %c0_3, %c0_4] : memref<2x1x64xf32, #tpu.memory_space<vmem>>, vector<2x1x64xf32>
    %3 = vector.shape_cast %2 : vector<2x1x64xf32> to vector<2x64xf32>
    %4 = arith.negf %3 : vector<2x64xf32>
    %5 = math.exp %4 : vector<2x64xf32>
    %cst = arith.constant 1.000000e+00 : f32
    %6 = vector.broadcast %cst : f32 to vector<2x64xf32>
    %7 = arith.addf %6, %5 : vector<2x64xf32>
    %8 = arith.divf %6, %7 : vector<2x64xf32>
    %9 = arith.mulf %3, %8 : vector<2x64xf32>
    %10 = arith.truncf %9 : vector<2x64xf32> to vector<2x64xbf16>
    %c0_5 = arith.constant 0 : index
    %c0_6 = arith.constant 0 : index
    %11 = vector.load %arg12[%c0_5, %c0_6] : memref<64x256xbf16, #tpu.memory_space<vmem>>, vector<64x256xbf16>
    %cst_7 = arith.constant dense<0.000000e+00> : vector<2x256xf32>
    %12 = tpu.matmul %10, %11, %cst_7 {dimension_numbers = #tpu.dot_dimension_numbers<[1], [0], [0], [1], [0, 0, 1, 1], [], []>} : vector<2x64xbf16>, vector<64x256xbf16>, vector<2x256xf32> -> vector<2x256xf32>
    %c0_8 = arith.constant 0 : index
    %c0_9 = arith.constant 0 : index
    %13 = vector.load %arg13[%c0_8, %c0_9] : memref<1x256xf32, #tpu.memory_space<vmem>>, vector<1x256xf32>
    %14 = vector.broadcast %13 : vector<1x256xf32> to vector<2x256xf32>
    %15 = arith.addf %12, %14 : vector<2x256xf32>
    %16 = vector.extract_strided_slice %15 {offsets = [0, 0], sizes = [2, 128], strides = [1, 1]} : vector<2x256xf32> to vector<2x128xf32>
    %17 = vector.shape_cast %16 : vector<2x128xf32> to vector<2x1x128xf32>
    %18 = vector.extract_strided_slice %15 {offsets = [0, 128], sizes = [2, 128], strides = [1, 1]} : vector<2x256xf32> to vector<2x128xf32>
    %19 = vector.shape_cast %18 : vector<2x128xf32> to vector<2x1x128xf32>
    %20 = arith.truncf %1 : vector<16x128xf32> to vector<16x128xbf16>
    %c0_10 = arith.constant 0 : index
    %c0_11 = arith.constant 0 : index
    %21 = vector.load %arg4[%c0_10, %c0_11] : memref<128x256xbf16, #tpu.memory_space<vmem>>, vector<128x256xbf16>
    %cst_12 = arith.constant dense<0.000000e+00> : vector<16x256xf32>
    %22 = tpu.matmul %20, %21, %cst_12 {dimension_numbers = #tpu.dot_dimension_numbers<[1], [0], [0], [1], [0, 0, 1, 1], [], []>} : vector<16x128xbf16>, vector<128x256xbf16>, vector<16x256xf32> -> vector<16x256xf32>
    %c0_13 = arith.constant 0 : index
    %c0_14 = arith.constant 0 : index
    %23 = vector.load %arg5[%c0_13, %c0_14] : memref<1x256xf32, #tpu.memory_space<vmem>>, vector<1x256xf32>
    %24 = vector.broadcast %23 : vector<1x256xf32> to vector<16x256xf32>
    %25 = arith.addf %22, %24 : vector<16x256xf32>
    %cst_15 = arith.constant 5.000000e-01 : f32
    %26 = vector.broadcast %cst_15 : f32 to vector<16x256xf32>
    %27 = arith.mulf %26, %25 : vector<16x256xf32>
    %cst_16 = arith.constant 0.707106769 : f32
    %28 = vector.broadcast %cst_16 : f32 to vector<16x256xf32>
    %29 = arith.mulf %25, %28 : vector<16x256xf32>
    %30 = math.erf %29 : vector<16x256xf32>
    %cst_17 = arith.constant 1.000000e+00 : f32
    %31 = vector.broadcast %cst_17 : f32 to vector<16x256xf32>
    %32 = arith.addf %31, %30 : vector<16x256xf32>
    %33 = arith.mulf %27, %32 : vector<16x256xf32>
    %34 = arith.truncf %33 : vector<16x256xf32> to vector<16x256xbf16>
    %c0_18 = arith.constant 0 : index
    %c0_19 = arith.constant 0 : index
    %35 = vector.load %arg6[%c0_18, %c0_19] : memref<256x128xbf16, #tpu.memory_space<vmem>>, vector<256x128xbf16>
    %cst_20 = arith.constant dense<0.000000e+00> : vector<16x128xf32>
    %36 = tpu.matmul %34, %35, %cst_20 {dimension_numbers = #tpu.dot_dimension_numbers<[1], [0], [0], [1], [0, 0, 1, 1], [], []>} : vector<16x256xbf16>, vector<256x128xbf16>, vector<16x128xf32> -> vector<16x128xf32>
    %c0_21 = arith.constant 0 : index
    %c0_22 = arith.constant 0 : index
    %37 = vector.load %arg7[%c0_21, %c0_22] : memref<1x128xf32, #tpu.memory_space<vmem>>, vector<1x128xf32>
    %38 = vector.broadcast %37 : vector<1x128xf32> to vector<16x128xf32>
    %39 = arith.addf %36, %38 : vector<16x128xf32>
    %40 = vector.shape_cast %39 : vector<16x128xf32> to vector<2x8x128xf32>
    %cst_23 = arith.constant dense<0.000000e+00> : vector<2x8xf32>
    %41 = vector.multi_reduction <add>, %40, %cst_23 [2] : vector<2x8x128xf32> to vector<2x8xf32>
    %42 = vector.shape_cast %41 : vector<2x8xf32> to vector<2x8x1xf32>
    %cst_24 = arith.constant 1.280000e+02 : f32
    %43 = vector.broadcast %cst_24 : f32 to vector<2x8x1xf32>
    %44 = arith.divf %42, %43 : vector<2x8x1xf32>
    %45 = arith.mulf %40, %40 : vector<2x8x128xf32>
    %cst_25 = arith.constant dense<0.000000e+00> : vector<2x8xf32>
    %46 = vector.multi_reduction <add>, %45, %cst_25 [2] : vector<2x8x128xf32> to vector<2x8xf32>
    %47 = vector.shape_cast %46 : vector<2x8xf32> to vector<2x8x1xf32>
    %cst_26 = arith.constant 1.280000e+02 : f32
    %48 = vector.broadcast %cst_26 : f32 to vector<2x8x1xf32>
    %49 = arith.divf %47, %48 : vector<2x8x1xf32>
    %50 = vector.broadcast %44 : vector<2x8x1xf32> to vector<2x8x128xf32>
    %51 = arith.subf %40, %50 : vector<2x8x128xf32>
    %52 = arith.mulf %44, %44 : vector<2x8x1xf32>
    %53 = arith.subf %49, %52 : vector<2x8x1xf32>
    %cst_27 = arith.constant 9.99999974E-6 : f32
    %54 = vector.broadcast %cst_27 : f32 to vector<2x8x1xf32>
    %55 = arith.addf %53, %54 : vector<2x8x1xf32>
    %56 = math.rsqrt %55 : vector<2x8x1xf32>
    %57 = vector.broadcast %56 : vector<2x8x1xf32> to vector<2x8x128xf32>
    %58 = arith.mulf %51, %57 : vector<2x8x128xf32>
    %c0_28 = arith.constant 0 : index
    %c0_29 = arith.constant 0 : index
    %59 = vector.load %arg8[%c0_28, %c0_29] : memref<1x128xf32, #tpu.memory_space<vmem>>, vector<1x128xf32>
    %60 = vector.shape_cast %59 : vector<1x128xf32> to vector<1x1x128xf32>
    %61 = vector.broadcast %60 : vector<1x1x128xf32> to vector<2x8x128xf32>
    %62 = arith.mulf %58, %61 : vector<2x8x128xf32>
    %c0_30 = arith.constant 0 : index
    %c0_31 = arith.constant 0 : index
    %63 = vector.load %arg9[%c0_30, %c0_31] : memref<1x128xf32, #tpu.memory_space<vmem>>, vector<1x128xf32>
    %64 = vector.shape_cast %63 : vector<1x128xf32> to vector<1x1x128xf32>
    %65 = vector.broadcast %64 : vector<1x1x128xf32> to vector<2x8x128xf32>
    %66 = arith.addf %62, %65 : vector<2x8x128xf32>
    %cst_32 = arith.constant 1.000000e+00 : f32
    %67 = vector.broadcast %cst_32 : f32 to vector<2x1x128xf32>
    %68 = arith.addf %67, %17 : vector<2x1x128xf32>
    %69 = vector.broadcast %68 : vector<2x1x128xf32> to vector<2x8x128xf32>
    %70 = arith.mulf %66, %69 : vector<2x8x128xf32>
    %71 = vector.broadcast %19 : vector<2x1x128xf32> to vector<2x8x128xf32>
    %72 = arith.addf %70, %71 : vector<2x8x128xf32>
    %73 = arith.negf %72 : vector<2x8x128xf32>
    %74 = math.exp %73 : vector<2x8x128xf32>
    %cst_33 = arith.constant 1.000000e+00 : f32
    %75 = vector.broadcast %cst_33 : f32 to vector<2x8x128xf32>
    %76 = arith.addf %75, %74 : vector<2x8x128xf32>
    %77 = arith.divf %75, %76 : vector<2x8x128xf32>
    %78 = arith.mulf %72, %77 : vector<2x8x128xf32>
    %79 = vector.shape_cast %78 : vector<2x8x128xf32> to vector<16x128xf32>
    %80 = arith.truncf %79 : vector<16x128xf32> to vector<16x128xbf16>
    %c0_34 = arith.constant 0 : index
    %c0_35 = arith.constant 0 : index
    %81 = vector.load %arg10[%c0_34, %c0_35] : memref<128x128xbf16, #tpu.memory_space<vmem>>, vector<128x128xbf16>
    %cst_36 = arith.constant dense<0.000000e+00> : vector<16x128xf32>
    %82 = tpu.matmul %80, %81, %cst_36 {dimension_numbers = #tpu.dot_dimension_numbers<[1], [0], [0], [1], [0, 0, 1, 1], [], []>} : vector<16x128xbf16>, vector<128x128xbf16>, vector<16x128xf32> -> vector<16x128xf32>
    %c0_37 = arith.constant 0 : index
    %c0_38 = arith.constant 0 : index
    %83 = vector.load %arg11[%c0_37, %c0_38] : memref<1x128xf32, #tpu.memory_space<vmem>>, vector<1x128xf32>
    %84 = vector.broadcast %83 : vector<1x128xf32> to vector<16x128xf32>
    %85 = arith.addf %82, %84 : vector<16x128xf32>
    %86 = vector.shape_cast %85 : vector<16x128xf32> to vector<2x8x128xf32>
    %87 = arith.addf %0, %86 : vector<2x8x128xf32>
    %c0_39 = arith.constant 0 : index
    %c0_40 = arith.constant 0 : index
    %c0_41 = arith.constant 0 : index
    %88 = vector.load %arg14[%c0_39, %c0_40, %c0_41] : memref<2x8x128xf32, #tpu.memory_space<vmem>>, vector<2x8x128xf32>
    tpu.vector_store %arg14[%c0_39, %c0_40, %c0_41], %87 {strides = array<i32>} : memref<2x8x128xf32, #tpu.memory_space<vmem>>, vector<2x8x128xf32>,
    return
  }
  func.func @transform_0(%arg0: i32, %arg1: i32) -> (i32, i32, i32) {
    %c0_i32 = arith.constant 0 : i32
    %c0_i32_0 = arith.constant 0 : i32
    return %arg1, %c0_i32, %arg0 : i32, i32, i32
  }
  func.func @transform_1(%arg0: i32, %arg1: i32) -> (i32, i32, i32) {
    %c0_i32 = arith.constant 0 : i32
    %c0_i32_0 = arith.constant 0 : i32
    %c0_i32_1 = arith.constant 0 : i32
    return %arg1, %c0_i32, %c0_i32_0 : i32, i32, i32
  }
  func.func @transform_2(%arg0: i32, %arg1: i32) -> (i32, i32) {
    %c0_i32 = arith.constant 0 : i32
    %c0_i32_0 = arith.constant 0 : i32
    %c0_i32_1 = arith.constant 0 : i32
    return %c0_i32, %c0_i32_0 : i32, i32
  }
  func.func @transform_3(%arg0: i32, %arg1: i32) -> (i32, i32) {
    %c0_i32 = arith.constant 0 : i32
    %c0_i32_0 = arith.constant 0 : i32
    %c0_i32_1 = arith.constant 0 : i32
    return %c0_i32, %c0_i32_0 : i32, i32
  }
  func.func @transform_4(%arg0: i32, %arg1: i32) -> (i32, i32) {
    %c0_i32 = arith.constant 0 : i32
    %c0_i32_0 = arith.constant 0 : i32
    %c0_i32_1 = arith.constant 0 : i32
    return %c0_i32, %c0_i32_0 : i32, i32
  }
  func.func @transform_5(%arg0: i32, %arg1: i32) -> (i32, i32) {
    %c0_i32 = arith.constant 0 : i32
    %c0_i32_0 = arith.constant 0 : i32
    %c0_i32_1 = arith.constant 0 : i32
    return %c0_i32, %c0_i32_0 : i32, i32
  }
  func.func @transform_6(%arg0: i32, %arg1: i32) -> (i32, i32) {
    %c0_i32 = arith.constant 0 : i32
    %c0_i32_0 = arith.constant 0 : i32
    %c0_i32_1 = arith.constant 0 : i32
    return %c0_i32, %c0_i32_0 : i32, i32
  }
  func.func @transform_7(%arg0: i32, %arg1: i32) -> (i32, i32) {
    %c0_i32 = arith.constant 0 : i32
    %c0_i32_0 = arith.constant 0 : i32
    %c0_i32_1 = arith.constant 0 : i32
    return %c0_i32, %c0_i32_0 : i32, i32
  }
  func.func @transform_8(%arg0: i32, %arg1: i32) -> (i32, i32) {
    %c0_i32 = arith.constant 0 : i32
    %c0_i32_0 = arith.constant 0 : i32
    %c0_i32_1 = arith.constant 0 : i32
    return %c0_i32, %c0_i32_0 : i32, i32
  }
  func.func @transform_9(%arg0: i32, %arg1: i32) -> (i32, i32) {
    %c0_i32 = arith.constant 0 : i32
    %c0_i32_0 = arith.constant 0 : i32
    %c0_i32_1 = arith.constant 0 : i32
    return %c0_i32, %c0_i32_0 : i32, i32
  }
  func.func @transform_10(%arg0: i32, %arg1: i32) -> (i32, i32) {
    %c0_i32 = arith.constant 0 : i32
    %c0_i32_0 = arith.constant 0 : i32
    %c0_i32_1 = arith.constant 0 : i32
    return %c0_i32, %c0_i32_0 : i32, i32
  }
  func.func @transform_11(%arg0: i32, %arg1: i32) -> (i32, i32) {
    %c0_i32 = arith.constant 0 : i32
    %c0_i32_0 = arith.constant 0 : i32
    %c0_i32_1 = arith.constant 0 : i32
    return %c0_i32, %c0_i32_0 : i32, i32
  }
  func.func @transform_12(%arg0: i32, %arg1: i32) -> (i32, i32, i32) {
    %c0_i32 = arith.constant 0 : i32
    %c0_i32_0 = arith.constant 0 : i32
    return %arg1, %c0_i32, %arg0 : i32, i32, i32
  }
}

</mosaic_0001>

<bundles_post_ra>
// kernel: _ffn_forward_jit.1
= control target key start
LH: loop header
LB: loop body
LE: loop exit
PB: predicated region body
PF: predicated region fallthrough
CT: control target
= control target key end

     0   :  { %s2096_s0 = inlined_call_operand.vmem [shape: f32[2,8,256], index: 0, kind: input, shape index: {}]   ;;  %s2097_s1 = inlined_call_operand.vmem [shape: f32[2,1,64], index: 1, kind: input, shape index: {}]   ;;  %s2098_s2 = inlined_call_operand.vmem [shape: bf16[128,256], index: 2, kind: input, shape index: {}]   ;;  %s2099_s3 = inlined_call_operand.vmem [shape: f32[1,256], index: 3, kind: input, shape index: {}]   ;;  %s2100_s4 = inlined_call_operand.vmem [shape: bf16[256,128], index: 4, kind: input, shape index: {}]   ;;  %s2101_s5 = inlined_call_operand.vmem [shape: f32[1,128], index: 5, kind: input, shape index: {}]   ;;  %s2102_s6 = inlined_call_operand.vmem [shape: f32[1,128], index: 6, kind: input, shape index: {}]   ;;  %s2103_s7 = inlined_call_operand.vmem [shape: f32[1,128], index: 7, kind: input, shape index: {}]   ;;  %s2104_s8 = inlined_call_operand.vmem [shape: bf16[128,128], index: 8, kind: input, shape index: {}]   ;;  %s2105_s9 = inlined_call_operand.vmem [shape: f32[1,128], index: 9, kind: input, shape index: {}]   ;;  %s2106_s10 = inlined_call_operand.vmem [shape: bf16[64,256], index: 10, kind: input, shape index: {}]   ;;  %s2107_s11 = inlined_call_operand.vmem [shape: f32[1,256], index: 11, kind: input, shape index: {}]   ;;  %s2108_s12 = inlined_call_operand.hbm [shape: f32[2,8,256], index: 12, kind: output, shape index: {}]  }
   0x1   :  { %2112 = sst [smem:[#allocation9_spill]] %s2096_s0 }
   0x2   :  { %17 = vsyncpa [#allocation4], 0 }
   0x3   :  { %19 = vsyncpa [#allocation4 + $0x1], 0  ;;  %s1758_s21 = smov 0   ;;  %s1760_s22 = smov 0  }
   0x4   :  { %s1762_s23 = smov 0   ;;  %s1764_s24 = smov 0  }
   0x5   :  { %s1766_s25 = smov 0   ;;  %s1768_s26 = smov 0  }
   0x6 LB: > { %2113 = sst [smem:[#allocation6_spill]] %s1679_s25  ;;  %s1335_s27 = sadd.s32 4294967295, %s1683_s26   ;;  %s1683_s26 = sphi %s1768_s26, %s25_s26   ;;  %s1679_s25 = sphi %s1766_s25, %s2122_s25   ;;  %s1675_s24 = sphi %s1764_s24, %s2121_s24   ;;  %s1671_s23 = sphi %s1762_s23, %s2125_s23   ;;  %s1667_s22 = sphi %s1760_s22, %s2124_s22   ;;  %s1663_s21 = sphi %s1758_s21, %s2123_s21  }
   0x7   : > { %s1336_s28 = sadd.s32 4294967294, %s1683_s26   ;;  %s37_s29 = sadd.s32 1, %s1679_s25 }
   0x8   : > { %s46_s30 = sadd.s32 1, %s1671_s23  ;;  %p39_p0 = scmp.ge.s32.totalorder %s37_s29, 2 }
   0x9   : > { %p53_p1 = scmp.ne.s32.totalorder %s1671_s23, %s1667_s22  ;;  %p54_p2 = scmp.eq.s32.totalorder %s1683_s26, 0 }
   0xa   : > { %p321_p3 = scmp.eq.s32.totalorder %s1335_s27, 1  ;;  %s2127_s29 = smov (%p39_p0, %s37_s29), 0 }
   0xb   : > { %2114 = sst [smem:[#allocation7_spill]] %s2127_s29  ;;  %p55_p4 = por %p54_p2, %p53_p1 }
   0xc   : > { %p1797_p5 = por %p321_p3, %p53_p1  ;;  %s42_s14 = ssub.s32 %s1679_s25, %s2127_s29 }
   0xd   : > { %p326_p6 = scmp.ne.s32.totalorder %s1667_s22, %s1663_s21  ;;  %p44_p7 = scmp.eq.s32.totalorder %s42_s14, 0 }
   0xe   : > { %p327_p8 = scmp.eq.s32.totalorder %s1336_s28, 1  ;;  %p1339_p10 = scmp.ge.s32.totalorder %s1683_s26, 2 }
   0xf   : > { %s1806_s15 = scalar_select %p44_p7, %s1671_s23, %s46_s30  }
  0x10   : > { %p1808_p9 = por %p327_p8, %p326_p6  ;;  %381 = sbr.rel (%p1339_p10) target bundleno = 32 (0x20), region = 60 }
  0x11   : > { %2116 = sst [smem:[#allocation8_spill]] %s1806_s15 }
  0x15   : > { %384 = sbr.rel (!%p55_p4) target bundleno = 32 (0x20), region = 64  ;;  %s386_s17 = sand.u32 (%p55_p4), 1, %s1671_s23  }
  0x16   : > { %s1341_s18 = sshll.u32 (%p55_p4), %s1679_s25, 3  ;;  %s1340_s19 = sshll.u32 (%p55_p4), %s386_s17, 4 }
  0x17   : > { %s2118_s0 = sld [smem:[#allocation9_spill]] (%p55_p4)  ;;  %s388_s30 = scalar_lea.vmem (%p55_p4), [#allocation2], %s1340_s19 }
  0x1d   : > { %s393_s28 = scalar_lea.vmem %s2118_s0, %s1341_s18 }
  0x1e   : > { %v424_v0 = vld [vmem:[%s393_s28] sm:$0xff]  ;;  %v426_v1 = vld [vmem:[%s393_s28 + $0x10] sm:$0xff] }
  0x1f   : > { %425 = vst [vmem:[%s388_s30] sm:$0xff] %v424_v0  ;;  %427 = vst [vmem:[%s388_s30 + $0x8] sm:$0xff] %v426_v1 }
  0x20 PF: > { %p1342_p11 = scmp.ge.s32.totalorder %s1683_s26, 1  ;;  %p432_p12 = scmp.lt.s32.totalorder %s1683_s26, 3 }
  0x22   : > { %p433_p13 = pnand %p1342_p11, %p432_p12 }
  0x23   : > { %s2111_s19 = sand.u32 (!%p433_p13), 1, %s1667_s22   ;;  %s1403_s28 = sshll.u32 (!%p433_p13), %s1675_s24, 7 }
  0x24   : > { %436 = sbr.rel (%p433_p13) target bundleno = 924 (0x39c), region = 102  ;;  %s1852_s29 = sshll.u32 (!%p433_p13), %s2111_s19, 4 }
  0x25   : > { %s441_s0 = scalar_lea.vmem (!%p433_p13), [#allocation2], %s1852_s29  ;;  %s483_s20 = scalar_lea.vmem (!%p433_p13), [#allocation3], %s1852_s29 }
  0x26   : > { %s1243_s27 = sshll.u32 (!%p433_p13), %s483_s20, 4  ;;  %s2119_s29 = sand.u32 (!%p433_p13), 1, %s1667_s22   ;;  %s2040_s27 = int_to_ptr.vmem [resolvable:$true] %s1243_s27 }
  0x27   : > { %s2050_s17 = scalar_lea.sflag (!%p433_p13), [#allocation4], %s2119_s29  ;;  %s1607_s24 = scalar_lea.vmem (!%p433_p13), %s2040_s27, 256 }
  0x28   : > { %p1608_p0 = scmp.ne.s32.totalorder (!%p433_p13), %s2040_s27, %s1607_s24  ;;  %s1689_s18 = smov (!%p433_p13), [#allocation3]  }
  0x29   : > { %v1519_v2 = vld [vmem:[%s2098_s2 + $0x74] ss:$8 sps:$4 sm:$0xff]   ;;  %v1521_v3 = vld [vmem:[%s2098_s2 + $0x70] ss:$8 sps:$4 sm:$0xff]   ;;  %v1685_v4 = vmov 0   ;;  %vm537_vm0 = vcmask 1041409   ;;  %v522_v1 = vlaneseq }
  0x2a   : > { %814 = vmatprep.mubr.bf16.mxu1 %v1685_v4  ;;  %616 = vmatprep.mubr.bf16.mxu0 %v1685_v4  ;;  %v1522_v5 = vld [vmem:[%s2098_s2 + $0x64] ss:$8 sps:$4 sm:$0xff]   ;;  %v1524_v6 = vld [vmem:[%s2098_s2 + $0x60] ss:$8 sps:$4 sm:$0xff]   ;;  %v1525_v7 = vld [vmem:[%s2098_s2 + $0x54] ss:$8 sps:$4 sm:$0xff]   ;;  %p1609_p1 = pnand %p1608_p0, %p1797_p5 }
  0x2b   : > { %782 = vmatprep.subr.bf16.mxu1 %v1519_v2  ;;  %v1527_v8 = vld [vmem:[%s2098_s2 + $0x50] ss:$8 sps:$4 sm:$0xff]   ;;  %v1528_v9 = vld [vmem:[%s2098_s2 + $0x44] ss:$8 sps:$4 sm:$0xff]   ;;  %v1530_v10 = vld [vmem:[%s2098_s2 + $0x40] ss:$8 sps:$4 sm:$0xff]  }
  0x2c   : > { %783 = vmatpush1.bf16.msra.mxu1 %v1521_v3  ;;  %v1531_v11 = vld [vmem:[%s2098_s2 + $0x34] ss:$8 sps:$4 sm:$0xff]   ;;  %v1545_v13 = vld [vmem:[%s2106_s10 + $0x30] ss:$8 sps:$4 sm:$0xff]   ;;  %v1546_v14 = vld [vmem:[%s2106_s10 + $0x24] ss:$8 sps:$4 sm:$0xff]   ;;  %p1610_p2 = pneg %p1609_p1 }
  0x2d   : > { %784 = vmatprep.subr.bf16.mxu1 %v1522_v5  ;;  %v1543_v12 = vld [vmem:[%s2106_s10 + $0x34] ss:$8 sps:$4 sm:$0xff]   ;;  %v1533_v15 = vld [vmem:[%s2098_s2 + $0x30] ss:$8 sps:$4 sm:$0xff]   ;;  %v1548_v16 = vld [vmem:[%s2106_s10 + $0x20] ss:$8 sps:$4 sm:$0xff]  }
  0x2e   : > { %592 = vmatprep.subr.bf16.mxu0 %v1543_v12  ;;  %v1534_v17 = vld [vmem:[%s2098_s2 + $0x24] ss:$8 sps:$4 sm:$0xff]   ;;  %v1549_v18 = vld [vmem:[%s2106_s10 + $0x14] ss:$8 sps:$4 sm:$0xff]   ;;  %v494_v19 = vld [vmem:[%s2097_s1] sm:$0x1] }
  0x2f   : > { %593 = vmatpush1.bf16.msra.mxu0 %v1545_v13  ;;  %v1536_v20 = vld [vmem:[%s2098_s2 + $0x20] ss:$8 sps:$4 sm:$0xff]   ;;  %v1551_v21 = vld [vmem:[%s2106_s10 + $0x10] ss:$8 sps:$4 sm:$0xff]   ;;  %v1345_v23 = vmul.f32 -1.442695, %v494_v19 }
  0x30   : > { %785 = vmatpush1.bf16.msra.mxu1 %v1524_v6  ;;  %594 = vmatprep.subr.bf16.mxu0 %v1546_v14  ;;  %v495_v22 = vld [vmem:[%s2097_s1 + $0x1] sm:$0x1]  ;;  %v1537_v24 = vld [vmem:[%s2098_s2 + $0x14] ss:$8 sps:$4 sm:$0xff]   ;;  %v1552_v25 = vld [vmem:[%s2106_s10 + $0x4] ss:$8 sps:$4 sm:$0xff]  }
  0x31   : > { %786 = vmatprep.subr.bf16.mxu1 %v1525_v7  ;;  %v1346_v26 = vmul.f32 -1.442695, %v495_v22  ;;  %1579 = vpow2.f32 %v1345_v23  ;;  %v1539_v27 = vld [vmem:[%s2098_s2 + $0x10] ss:$8 sps:$4 sm:$0xff]   ;;  %v1554_v28 = vld [vmem:[%s2106_s10] ss:$8 sps:$4 sm:$0xff]  }
  0x32   : > { %v1540_v29 = vld [vmem:[%s2098_s2 + $0x4] ss:$8 sps:$4 sm:$0xff]   ;;  %v1542_v30 = vld [vmem:[%s2098_s2] ss:$8 sps:$4 sm:$0xff]   ;;  %vm580_vm1 = vcmask 523264   ;;  %v1555_v49 = vld [vmem:[%s2100_s4 + $0x78] sm:$0xff]  }
  0x33   : > { %595 = vmatpush1.bf16.msra.mxu0 %v1548_v16  ;;  %1581 = vpow2.f32 %v1346_v26  ;;  %v1906_v31 = vld [vmem:[%s441_s0] sm:$0xff]  ;;  %v1908_v32 = vld [vmem:[%s441_s0 + $0x8] sm:$0xff]  ;;  %v1960_v2 = vshrl.u32 %v522_v1, 7  ;;  %vm1687_vm2 = vmmov 0   ;;  %s2045_s0 = scalar_lea.hbm %s2108_s12, %s1403_s28  ;;  %s1611_s15 = sshll.u32 %s1689_s18, 4  ;;  %s1612_s15 = int_to_ptr.vmem [resolvable:$false] %s1611_s15 }
  0x34   : > { %787 = vmatpush1.bf16.msra.mxu1 %v1527_v8  ;;  %596 = vmatprep.subr.bf16.mxu0 %v1549_v18  ;;  %v673_v33 = vpack.c.bf16 %v1908_v32, %v1906_v31  ;;  %v1556_v50 = vld [vmem:[%s2100_s4 + $0x38] sm:$0xff]   ;;  %v1557_v51 = vld [vmem:[%s2100_s4 + $0x70] sm:$0xff]   ;;  %v1559_v53 = vld [vmem:[%s2100_s4 + $0x68] sm:$0xff]   ;;  %s1613_s19 = scalar_lea.vmem %s1612_s15, 512  ;;  %p1614_p3 = scmp.lt.s32.totalorder %s2040_s27, %s1612_s15 }
  0x35   : > { %788 = vmatprep.subr.bf16.mxu1 %v1528_v9  ;;  %v1558_v52 = vld [vmem:[%s2100_s4 + $0x30] sm:$0xff]   ;;  %v1560_v54 = vld [vmem:[%s2100_s4 + $0x28] sm:$0xff]   ;;  %v1561_v55 = vld [vmem:[%s2100_s4 + $0x60] sm:$0xff]   ;;  %v1963_v3 = vsub.s32 0, %v1960_v2  ;;  %v528_v5 = vsub.s32 1, %v1960_v2  ;;  %p1615_p4 = scmp.lt.s32.totalorder %s1613_s19, %s1607_s24 }
  0x36   : > { %v1562_v56 = vld [vmem:[%s2100_s4 + $0x20] sm:$0xff]   ;;  %v1563_v57 = vld [vmem:[%s2100_s4 + $0x58] sm:$0xff]   ;;  %v1565_v59 = vld [vmem:[%s2100_s4 + $0x50] sm:$0xff]  }
  0x37   : > { %597 = vmatpush1.bf16.msra.mxu0 %v1551_v21  ;;  %v1564_v58 = vld [vmem:[%s2100_s4 + $0x18] sm:$0xff]   ;;  %v1566_v60 = vld [vmem:[%s2100_s4 + $0x10] sm:$0xff]   ;;  %v1567_v61 = vld [vmem:[%s2100_s4 + $0x48] sm:$0xff]   ;;  %p1616_p6 = por %p1615_p4, %p1614_p3 }
  0x38   : > { %789 = vmatpush1.bf16.msra.mxu1 %v1530_v10  ;;  %598 = vmatprep.subr.bf16.mxu0 %v1552_v25  ;;  %v1568_v62 = vld [vmem:[%s2100_s4 + $0x8] sm:$0xff]   ;;  %v1569_v63 = vld [vmem:[%s2100_s4 + $0x40] sm:$0xff]  }
  0x39   : > { %790 = vmatprep.subr.bf16.mxu1 %v1531_v11  ;;  %v1570_v0 = vld [vmem:[%s2100_s4] sm:$0xff]   ;;  %v1577_v1 = vld [vmem:[%s2104_s8 + $0x8] sm:$0xff]   ;;  %p1617_p7 = pnand %p1616_p6, %p1610_p2 }
  0x3a   : > { %v690_v4 = vld [vmem:[%s2099_s3] sm:$0x3] }
  0x3b   : > { %599 = vmatpush1.bf16.msra.mxu0 %v1554_v28  ;;  %v695_v6 = vrot.slane %v690_v4, %v1963_v3  ;;  %v699_v7 = vrot.slane %v690_v4, %v528_v5  ;;  %v1973_v25 = vld [vmem:[%s2107_s11] sm:$0x3] }
  0x3c   : > { %791 = vmatpush1.bf16.msra.mxu1 %v1533_v15  ;;  %1406 = vmatprep.subr.bf16.mxu0 %v1555_v49  ;;  %v1578_v4 = vld [vmem:[%s2104_s8] sm:$0xff]  }
  0x3d   : > { %792 = vmatprep.subr.bf16.mxu1 %v1534_v17 }
  0x3e   : > { %v1580_v34 = vpop.eup %1579 }
  0x3f   : > { %v502_v36 = vadd.f32 1.0, %v1580_v34 }
  0x40   : > { %793 = vmatpush1.bf16.msra.mxu1 %v1536_v20  ;;  %v1582_v35 = vpop.eup %1581 }
  0x41   : > { %794 = vmatprep.subr.bf16.mxu1 %v1537_v24  ;;  %v503_v37 = vadd.f32 1.0, %v1582_v35  ;;  %1583 = vrcp.f32 %v502_v36  ;;  %v529_v36 = vrot.slane %v1973_v25, %v528_v5 }
  0x43   : > { %1585 = vrcp.f32 %v503_v37 }
  0x44   : > { %795 = vmatpush1.bf16.msra.mxu1 %v1539_v27 }
  0x45   : > { %796 = vmatprep.subr.bf16.mxu1 %v1540_v29 }
  0x48   : > { %797 = vmatpush1.bf16.msra.mxu1 %v1542_v30 }
  0x4b   : > { %815 = vmatmul.mubr.bf16.vlgmr.msra.gmra.mxu1 %v673_v33 }
  0x4e   : > { %v1584_v38 = vpop.eup %1583 }
  0x4f   : > { %v508_v40 = vmul.f32 %v1584_v38, %v494_v19 }
  0x50   : > { %v1586_v39 = vpop.eup %1585 }
  0x51   : > { %v509_v41 = vmul.f32 %v1586_v39, %v495_v22  ;;  %v510_v42 = vpack.c.bf16 %v508_v40, %v508_v40 }
  0x53   : > { %v511_v43 = vpack.c.bf16 %v509_v41, %v509_v41  ;;  %v534_v44 = vunpack.c.l.b16 %v510_v42 }
  0x55   : > { %v535_v45 = vunpack.c.l.b16 %v511_v43 }
  0x57   : > { %v536_v46 = vrot.slane %v535_v45, 7 }
  0x59   : > { %v538_v47 = vsel %vm537_vm0, %v536_v46, %v534_v44 }
  0x5a   : > { %v539_v48 = vpack.c.b16 %v538_v47, %v538_v47 }
  0x5c   : > { %1355 = vmatmul.mubr.msk.bf16.vlgmr.msra.gmra.mxu0 %vm580_vm1, %v539_v48  ;;  %v1372_v48 = vld [vmem:[%s2101_s5] ss:$0 sm:$0xff] }
  0x5d   : > { %1407 = vmatpush3.bf16.msra.mxu0 %v1556_v50 }
  0x5e   : > { %1408 = vmatprep.subr.bf16.mxu0 %v1557_v51 }
  0x61   : > { %1409 = vmatpush3.bf16.msra.mxu0 %v1558_v52 }
  0x62   : > { %1410 = vmatprep.subr.bf16.mxu0 %v1559_v53 }
  0x65   : > { %1411 = vmatpush3.bf16.msra.mxu0 %v1560_v54 }
  0x66   : > { %1412 = vmatprep.subr.bf16.mxu0 %v1561_v55 }
  0x69   : > { %1413 = vmatpush3.bf16.msra.mxu0 %v1562_v56 }
  0x6a   : > { %1414 = vmatprep.subr.bf16.mxu0 %v1563_v57 }
  0x6d   : > { %1415 = vmatpush3.bf16.msra.mxu0 %v1564_v58  ;;  %v1571_v58 = vld [vmem:[%s2104_s8 + $0x38] sm:$0xff]  }
  0x6e   : > { %1416 = vmatprep.subr.bf16.mxu0 %v1565_v59  ;;  %v1686_v59 = vmov 0.0  }
  0x6f   : > { %1437 = vmatprep.subr.bf16.mxu1 %v1686_v59  ;;  %1453 = vmatprep.mubr.msk.bf16.mxu1 %vm1687_vm2, %v1686_v59 }
  0x70   : > { %1438 = vmatpush3.bf16.msra.mxu1 %v1571_v58 }
  0x71   : > { %1417 = vmatpush3.bf16.msra.mxu0 %v1566_v60  ;;  %v1572_v60 = vld [vmem:[%s2104_s8 + $0x30] sm:$0xff]   ;;  %1439 = vmatprep.subr.bf16.mxu1 %v1686_v59 }
  0x72   : > { %1418 = vmatprep.subr.bf16.mxu0 %v1567_v61  ;;  %v1573_v61 = vld [vmem:[%s2104_s8 + $0x28] sm:$0xff]  }
  0x74   : > { %1440 = vmatpush3.bf16.msra.mxu1 %v1572_v60 }
  0x75   : > { %1419 = vmatpush3.bf16.msra.mxu0 %v1568_v62  ;;  %1441 = vmatprep.subr.bf16.mxu1 %v1686_v59  ;;  %v1574_v62 = vld [vmem:[%s2104_s8 + $0x20] sm:$0xff]  }
  0x76   : > { %1420 = vmatprep.subr.bf16.mxu0 %v1569_v63  ;;  %v1575_v63 = vld [vmem:[%s2104_s8 + $0x18] sm:$0xff]  }
  0x78   : > { %1442 = vmatpush3.bf16.msra.mxu1 %v1573_v61 }
  0x79   : > { %1421 = vmatpush3.bf16.msra.mxu0 %v1570_v0  ;;  %1443 = vmatprep.subr.bf16.mxu1 %v1686_v59  ;;  %v1576_v0 = vld [vmem:[%s2104_s8 + $0x10] sm:$0xff]  }
  0x7c   : > { %1444 = vmatpush3.bf16.msra.mxu1 %v1574_v62 }
  0x7d   : > { %1445 = vmatprep.subr.bf16.mxu1 %v1686_v59 }
  0x80   : > { %1446 = vmatpush3.bf16.msra.mxu1 %v1575_v63 }
  0x81   : > { %1447 = vmatprep.subr.bf16.mxu1 %v1686_v59 }
  0x84   : > { %1448 = vmatpush3.bf16.msra.mxu1 %v1576_v0 }
  0x85   : > { %1449 = vmatprep.subr.bf16.mxu1 %v1686_v59 }
  0x88   : > { %1450 = vmatpush3.bf16.msra.mxu1 %v1577_v1 }
  0x89   : > { %1451 = vmatprep.subr.bf16.mxu1 %v1686_v59 }
  0x8c   : > { %1452 = vmatpush3.bf16.msra.mxu1 %v1578_v4 }
 0x10b   : > { %v816_v8 = vpop.f32.mrf.mxu1 }
 0x10c   : > { %v817_v9 = vadd.f32 %v816_v8, %v695_v6  ;;  %v1688_v8 = vmov 1966171168  }
 0x10d   : > { %v818_v10 = vpop.f32.mrf.mxu1 }
 0x10e   : > { %v819_v11 = vadd.f32 %v818_v10, %v699_v7  ;;  %v829_v12 = vmul.f32 0.70710677, %v817_v9  ;;  %v825_v34 = vmul.f32 0.5, %v817_v9  ;;  %v627_v9 = vunpack.c.l.s4 %v1688_v8 }
 0x10f   : > { %v820_v13 = vpop.f32.mrf.mxu1 }
 0x110   : > { %v830_v14 = vmul.f32 0.70710677, %v819_v11  ;;  %v821_v15 = vadd.f32 %v820_v13, %v695_v6  ;;  %v826_v29 = vmul.f32 0.5, %v819_v11 }
 0x111   : > { %v822_v16 = vpop.f32.mrf.mxu1 }
 0x112   : > { %1587 = verf.f32 %v830_v14  ;;  %v831_v17 = vmul.f32 0.70710677, %v821_v15  ;;  %v823_v18 = vadd.f32 %v822_v16, %v699_v7  ;;  %v827_v28 = vmul.f32 0.5, %v821_v15 }
 0x113   : > { %1589 = verf.f32 %v829_v12  ;;  %v525_v15 = vrot.slane %v1973_v25, %v1963_v3 }
 0x114   : > { %1591 = verf.f32 %v831_v17  ;;  %v832_v19 = vmul.f32 0.70710677, %v823_v18  ;;  %v828_v30 = vmul.f32 0.5, %v823_v18  ;;  %v628_v17 = vunpack.c.0.s8 %v627_v9 }
 0x116   : > { %1593 = verf.f32 %v832_v19 }
 0x11c   : > { %v1976_v39 = vpop.f32.mrf.mxu0 }
 0x11e   : > { %v620_v42 = vpop.f32.mrf.mxu0 }
 0x11f   : > { %v1588_v20 = vpop.eup %1587  ;;  %v1978_v44 = vadd.f32 %v620_v42, %v529_v36 }
 0x120   : > { %v1590_v21 = vpop.eup %1589  ;;  %v838_v23 = vadd.f32 1.0, %v1588_v20  ;;  %v622_v45 = vpop.f32.mrf.mxu0 }
 0x121   : > { %v1592_v22 = vpop.eup %1591  ;;  %v837_v27 = vadd.f32 1.0, %v1590_v21 }
 0x122   : > { %v839_v24 = vadd.f32 1.0, %v1592_v22  ;;  %v842_v37 = vmul.f32 %v838_v23, %v826_v29  ;;  %v623_v46 = vpop.f32.mrf.mxu0  ;;  %v619_v22 = vadd.f32 %v1976_v39, %v525_v15  ;;  %v631_v23 = vsub.s32 %v628_v17, %v1960_v2  ;;  %v1390_v2 = vld [vmem:[%s2103_s7] ss:$0 sm:$0xff] }
 0x123   : > { %v1594_v26 = vpop.eup %1593  ;;  %v841_v40 = vmul.f32 %v837_v27, %v825_v34 }
 0x124   : > { %v840_v33 = vadd.f32 1.0, %v1594_v26  ;;  %v843_v35 = vmul.f32 %v839_v24, %v827_v28  ;;  %v632_v26 = vrot.slane %v619_v22, %v631_v23  ;;  %v657_v29 = vrot.slane %v1978_v44, %v631_v23 }
 0x126   : > { %v844_v38 = vmul.f32 %v840_v33, %v828_v30  ;;  %v845_v43 = vpack.c.bf16 %v843_v35, %v841_v40  ;;  %v633_v27 = vcombine.high %v632_v26, %v632_v26  ;;  %v640_v28 = vrot.slane %v632_v26, %v631_v23  ;;  %v1389_v33 = vld [vmem:[%s2102_s6] ss:$0 sm:$0xff] }
 0x128   : > { %v846_v41 = vpack.c.bf16 %v844_v38, %v842_v37  ;;  %v647_v34 = vrot.slane %v633_v27, %v631_v23  ;;  %v1068_v35 = vadd.f32 1.0, %v640_v28  ;;  %v658_v37 = vcombine.high %v657_v29, %v657_v29 }
 0x129   : > { %v665_v38 = vrot.slane %v657_v29, %v631_v23 }
 0x12a   : > { %1014 = vmatprep.mubr.bf16.mxu0 %v846_v41  ;;  %v1069_v42 = vadd.f32 1.0, %v647_v34  ;;  %v672_v46 = vrot.slane %v658_v37, %v631_v23 }
 0x12b   : > { %1015 = vmatmul.mubr.bf16.vlgmr.msra.gmra.mxu0 %v845_v43  ;;  %v1075_v43 = vrot.slane %v1068_v35, %v1963_v3 }
 0x1eb   : > { %v1422_v47 = vpop.f32.mrf.mxu0 }
 0x1ed   : > { %v1423_v49 = vpop.f32.mrf.mxu0 }
 0x1ee   : > { %v1424_v50 = vadd.f32 %v1423_v49, %v1422_v47  ;;  %v1087_v47 = vrot.slane %v665_v38, %v1963_v3 }
 0x1ef   : > { %v1425_v51 = vpop.f32.mrf.mxu0 }
 0x1f0   : > { %v1983_v52 = vadd.f32 %v1424_v50, %v1372_v48  ;;  %v1079_v50 = vrot.slane %v1069_v42, %v1963_v3 }
 0x1f1   : > { %v1426_v53 = vpop.f32.mrf.mxu0 }
 0x1f2   : > { %v1427_v54 = vadd.f32 %v1426_v53, %v1425_v51  ;;  %1023 = vadd.xlane.f32.xlu0 %v1983_v52  ;;  %v1030_v55 = vmul.f32 %v1983_v52, %v1983_v52  ;;  %v1091_v53 = vrot.slane %v672_v46, %v1963_v3  ;;  %v1393_v3 = vld [vmem:[%s2105_s9] ss:$0 sm:$0xff] }
 0x1f4   : > { %v1988_v56 = vadd.f32 %v1427_v54, %v1372_v48  ;;  %1032 = vadd.xlane.f32.xlu1 %v1030_v55 }
 0x1f6   : > { %1025 = vadd.xlane.f32.xlu0 %v1988_v56  ;;  %v1031_v57 = vmul.f32 %v1988_v56, %v1988_v56 }
 0x1f8   : > { %1034 = vadd.xlane.f32.xlu1 %v1031_v57 }
 0x27b   : > { %v1024_v5 = vpop.xlane.xlu0 %1023 }
 0x27c   : > { %v1028_v6 = vmul.f32 0.0078125, %v1024_v5 }
 0x27d   : > { %v1033_v7 = vpop.xlane.xlu1 %1032 }
 0x27e   : > { %v1040_v10 = vmul.f32 %v1028_v6, %v1028_v6  ;;  %v1036_v11 = vmul.f32 0.0078125, %v1033_v7  ;;  %v1038_v25 = vsub.f32 %v1983_v52, %v1028_v6 }
 0x27f   : > { %v1026_v12 = vpop.xlane.xlu0 %1025 }
 0x280   : > { %v1042_v13 = vsub.f32 %v1036_v11, %v1040_v10  ;;  %v1029_v14 = vmul.f32 0.0078125, %v1026_v12 }
 0x281   : > { %v1035_v16 = vpop.xlane.xlu1 %1034 }
 0x282   : > { %v1044_v18 = vadd.f32 1e-05, %v1042_v13  ;;  %v1041_v19 = vmul.f32 %v1029_v14, %v1029_v14  ;;  %v1037_v20 = vmul.f32 0.0078125, %v1035_v16  ;;  %v1039_v39 = vsub.f32 %v1988_v56, %v1029_v14 }
 0x284   : > { %1595 = vrsqrt.f32 %v1044_v18  ;;  %v1043_v21 = vsub.f32 %v1037_v20, %v1041_v19 }
 0x286   : > { %v1045_v24 = vadd.f32 1e-05, %v1043_v21 }
 0x288   : > { %1597 = vrsqrt.f32 %v1045_v24 }
 0x291   : > { %v1596_v30 = vpop.eup %1595 }
 0x292   : > { %v1048_v36 = vmul.f32 %v1596_v30, %v1038_v25 }
 0x294   : > { %v1057_v40 = vmul.f32 %v1389_v33, %v1048_v36 }
 0x295   : > { %v1598_v41 = vpop.eup %1597 }
 0x296   : > { %v1049_v44 = vmul.f32 %v1598_v41, %v1039_v39  ;;  %v1066_v45 = vadd.f32 %v1390_v2, %v1057_v40 }
 0x298   : > { %v1058_v48 = vmul.f32 %v1389_v33, %v1049_v44  ;;  %v1082_v49 = vmul.f32 %v1075_v43, %v1066_v45 }
 0x29a   : > { %v1067_v51 = vadd.f32 %v1390_v2, %v1058_v48  ;;  %v1094_v52 = vadd.f32 %v1087_v47, %v1082_v49 }
 0x29c   : > { %v1083_v54 = vmul.f32 %v1079_v50, %v1067_v51  ;;  %v1391_v55 = vmul.f32 -1.442695, %v1094_v52 }
 0x29e   : > { %v1095_v56 = vadd.f32 %v1091_v53, %v1083_v54  ;;  %1599 = vpow2.f32 %v1391_v55 }
 0x2a0   : > { %v1392_v57 = vmul.f32 -1.442695, %v1095_v56 }
 0x2a2   : > { %1601 = vpow2.f32 %v1392_v57 }
 0x2ab   : > { %v1600_v58 = vpop.eup %1599 }
 0x2ac   : > { %v1102_v59 = vadd.f32 1.0, %v1600_v58 }
 0x2ae   : > { %1603 = vrcp.f32 %v1102_v59 }
 0x2af   : > { %v1602_v60 = vpop.eup %1601 }
 0x2b0   : > { %v1103_v61 = vadd.f32 1.0, %v1602_v60 }
 0x2b2   : > { %1605 = vrcp.f32 %v1103_v61 }
 0x2bb   : > { %v1604_v62 = vpop.eup %1603 }
 0x2bc   : > { %v1108_v0 = vmul.f32 %v1604_v62, %v1094_v52 }
 0x2bf   : > { %v1606_v63 = vpop.eup %1605 }
 0x2c0   : > { %v1109_v1 = vmul.f32 %v1606_v63, %v1095_v56 }
 0x2c2   : > { %v1110_v4 = vpack.c.bf16 %v1109_v1, %v1108_v0 }
 0x2c4   : > { %1454 = vmatmul.mubr.bf16.vlgmr.msra.gmra.mxu1 %v1110_v4 }
 0x384   : > { %v1216_v5 = vpop.f32.mrf.mxu1 }
 0x385   : > { %v1217_v6 = vadd.f32 %v1393_v3, %v1216_v5 }
 0x386   : > { %v1455_v7 = vpop.f32.mrf.mxu1 }
 0x387   : > { %v1223_v8 = vadd.f32 %v1217_v6, %v1906_v31 }
 0x388   : > { %v1219_v9 = vpop.f32.mrf.mxu1 }
 0x389   : > { %1225 = vst [vmem:[%s483_s20] sm:$0xff] %v1223_v8  ;;  %v1220_v10 = vadd.f32 %v1393_v3, %v1219_v9 }
 0x38a   : > { %v1456_v11 = vpop.f32.mrf.mxu1 }
 0x38b   : > { %v1224_v12 = vadd.f32 %v1220_v10, %v1908_v32 }
 0x38d   : > { %1226 = vst [vmem:[%s483_s20 + $0x8] sm:$0xff] %v1224_v12 }
 0x38e   : > { %1620 = shalt.err (!%p1617_p7)
}
 0x38f   : > { %s1621_s25 = scalar_lea.hbm %s2045_s0, 256  ;;  %s1625_s30 = scalar_lea.hbm %s2108_s12, 512 }
 0x390   : > { %p1622_p8 = scmp.ne.s32.totalorder %s2045_s0, %s1621_s25  ;;  %p1626_p13 = scmp.lt.s32.totalorder %s2045_s0, %s2108_s12 }
 0x391   : > { %p1627_p0 = scmp.lt.s32.totalorder %s1625_s30, %s1621_s25 }
 0x392   : > { %p1623_p11 = pnand %p1622_p8, %p1797_p5 }
 0x393   : > { %p1628_p1 = por %p1627_p0, %p1626_p13 }
 0x394   : > { %p1624_p12 = pneg %p1623_p11 }
 0x396   : > { %p1629_p2 = pnand %p1628_p1, %p1624_p12 }
 0x398   : > { %1632 = shalt.err (!%p1629_p2)
}
 0x399   : > { %s1690_s24 = smov 128   ;;  %s1691_s18 = smov 256  }
 0x39a   : > { %s1692_s15 = smov 8  }
 0x39b   : > { %1457 = dma.vmem_to_hbm [thread:$0]  (%p1797_p5), %s2040_s27, 256, %s2045_s0, %s2050_s17, %s1690_s24, %s1691_s18, %s1692_s15  }
 0x39c PF: > { %s1258_s19 = sand.u32 1, %s1663_s21   ;;  %p1460_p3 = pnand %p1339_p10, %p1808_p9 }
 0x39d   : > { %s1259_s25 = scalar_lea.sflag [#allocation4], %s1258_s19 }
 0x39e   : > { %p1461_p4 = pneg %p1460_p3 }
 0x3a0   : > { %1658 = dma.done.wait (%p1461_p4), %s1259_s25, 256  }
 0x3a1   : > { %1660 = vsyncadd (%p1461_p4), %s1259_s25, 4294967040  ;;  %s25_s26 = sadd.s32 1, %s1683_s26   ;;  %s2120_s20 = sld [smem:[#allocation8_spill]] }
 0x3a2   : > { %p22_p6 = scmp.ge.s32.totalorder %s25_s26, 4   ;;  %s2121_s24 = sld [smem:[#allocation6_spill]] }
 0x3a3   : > { %s2122_s25 = sld [smem:[#allocation7_spill]]  ;;  %s2123_s21 = smov %s1667_s22 }
 0x3a4   : > { %s2124_s22 = smov %s1671_s23  ;;  %24 = sbr.rel (!%p22_p6) target bundleno = 6 (0x6), region = 149 }
 0x3a7   : > { %s2125_s23 = smov %s2120_s20 }
 0x3a9   :  { %1264 = vsyncpa [#allocation4], 1 }
 0x3aa   :  { %1266 = vsyncpa [#allocation4 + $0x1], 1 }

// kernel: _ffn_forward_jit.1
= control target key start
LH: loop header
LB: loop body
LE: loop exit
PB: predicated region body
PF: predicated region fallthrough
CT: control target
= control target key end

     0   :  { %s2096_s0 = inlined_call_operand.vmem [shape: f32[2,8,256], index: 0, kind: input, shape index: {}]   ;;  %s2097_s1 = inlined_call_operand.vmem [shape: f32[2,1,64], index: 1, kind: input, shape index: {}]   ;;  %s2098_s2 = inlined_call_operand.vmem [shape: bf16[128,256], index: 2, kind: input, shape index: {}]   ;;  %s2099_s3 = inlined_call_operand.vmem [shape: f32[1,256], index: 3, kind: input, shape index: {}]   ;;  %s2100_s4 = inlined_call_operand.vmem [shape: bf16[256,128], index: 4, kind: input, shape index: {}]   ;;  %s2101_s5 = inlined_call_operand.vmem [shape: f32[1,128], index: 5, kind: input, shape index: {}]   ;;  %s2102_s6 = inlined_call_operand.vmem [shape: f32[1,128], index: 6, kind: input, shape index: {}]   ;;  %s2103_s7 = inlined_call_operand.vmem [shape: f32[1,128], index: 7, kind: input, shape index: {}]   ;;  %s2104_s8 = inlined_call_operand.vmem [shape: bf16[128,128], index: 8, kind: input, shape index: {}]   ;;  %s2105_s9 = inlined_call_operand.vmem [shape: f32[1,128], index: 9, kind: input, shape index: {}]   ;;  %s2106_s10 = inlined_call_operand.vmem [shape: bf16[64,256], index: 10, kind: input, shape index: {}]   ;;  %s2107_s11 = inlined_call_operand.vmem [shape: f32[1,256], index: 11, kind: input, shape index: {}]   ;;  %s2108_s12 = inlined_call_operand.hbm [shape: f32[2,8,256], index: 12, kind: output, shape index: {}]  }
   0x1   :  { %2112 = sst [smem:[#allocation9_spill]] %s2096_s0 }
   0x2   :  { %17 = vsyncpa [#allocation4], 0 }
   0x3   :  { %19 = vsyncpa [#allocation4 + $0x1], 0  ;;  %s1758_s21 = smov 0   ;;  %s1760_s22 = smov 0  }
   0x4   :  { %s1762_s23 = smov 0   ;;  %s1764_s24 = smov 0  }
   0x5   :  { %s1766_s25 = smov 0   ;;  %s1768_s26 = smov 0  }
   0x6 LB: > { %2113 = sst [smem:[#allocation6_spill]] %s1679_s25  ;;  %s1335_s27 = sadd.s32 4294967295, %s1683_s26   ;;  %s1683_s26 = sphi %s1768_s26, %s25_s26   ;;  %s1679_s25 = sphi %s1766_s25, %s2122_s25   ;;  %s1675_s24 = sphi %s1764_s24, %s2121_s24   ;;  %s1671_s23 = sphi %s1762_s23, %s2125_s23   ;;  %s1667_s22 = sphi %s1760_s22, %s2124_s22   ;;  %s1663_s21 = sphi %s1758_s21, %s2123_s21  }
   0x7   : > { %s1336_s28 = sadd.s32 4294967294, %s1683_s26   ;;  %s37_s29 = sadd.s32 1, %s1679_s25 }
   0x8   : > { %s46_s30 = sadd.s32 1, %s1671_s23  ;;  %p39_p0 = scmp.ge.s32.totalorder %s37_s29, 2 }
   0x9   : > { %p53_p1 = scmp.ne.s32.totalorder %s1671_s23, %s1667_s22  ;;  %p54_p2 = scmp.eq.s32.totalorder %s1683_s26, 0 }
   0xa   : > { %p321_p3 = scmp.eq.s32.totalorder %s1335_s27, 1  ;;  %s2127_s29 = smov (%p39_p0, %s37_s29), 0 }
   0xb   : > { %2114 = sst [smem:[#allocation7_spill]] %s2127_s29  ;;  %p55_p4 = por %p54_p2, %p53_p1 }
   0xc   : > { %p1797_p5 = por %p321_p3, %p53_p1  ;;  %s42_s14 = ssub.s32 %s1679_s25, %s2127_s29 }
   0xd   : > { %p326_p6 = scmp.ne.s32.totalorder %s1667_s22, %s1663_s21  ;;  %p44_p7 = scmp.eq.s32.totalorder %s42_s14, 0 }
   0xe   : > { %p327_p8 = scmp.eq.s32.totalorder %s1336_s28, 1  ;;  %p1339_p10 = scmp.ge.s32.totalorder %s1683_s26, 2 }
   0xf   : > { %s1806_s15 = scalar_select %p44_p7, %s1671_s23, %s46_s30  }
  0x10   : > { %p1808_p9 = por %p327_p8, %p326_p6  ;;  %381 = sbr.rel (%p1339_p10) target bundleno = 32 (0x20), region = 60 }
  0x11   : > { %2116 = sst [smem:[#allocation8_spill]] %s1806_s15 }
  0x15   : > { %384 = sbr.rel (!%p55_p4) target bundleno = 32 (0x20), region = 64  ;;  %s386_s17 = sand.u32 (%p55_p4), 1, %s1671_s23  }
  0x16   : > { %s1341_s18 = sshll.u32 (%p55_p4), %s1679_s25, 3  ;;  %s1340_s19 = sshll.u32 (%p55_p4), %s386_s17, 4 }
  0x17   : > { %s2118_s0 = sld [smem:[#allocation9_spill]] (%p55_p4)  ;;  %s388_s30 = scalar_lea.vmem (%p55_p4), [#allocation2], %s1340_s19 }
  0x1d   : > { %s393_s28 = scalar_lea.vmem %s2118_s0, %s1341_s18 }
  0x1e   : > { %v424_v0 = vld [vmem:[%s393_s28] sm:$0xff]  ;;  %v426_v1 = vld [vmem:[%s393_s28 + $0x10] sm:$0xff] }
  0x1f   : > { %425 = vst [vmem:[%s388_s30] sm:$0xff] %v424_v0  ;;  %427 = vst [vmem:[%s388_s30 + $0x8] sm:$0xff] %v426_v1 }
  0x20 PF: > { %p1342_p11 = scmp.ge.s32.totalorder %s1683_s26, 1  ;;  %p432_p12 = scmp.lt.s32.totalorder %s1683_s26, 3 }
  0x22   : > { %p433_p13 = pnand %p1342_p11, %p432_p12 }
  0x23   : > { %s2111_s19 = sand.u32 (!%p433_p13), 1, %s1667_s22   ;;  %s1403_s28 = sshll.u32 (!%p433_p13), %s1675_s24, 7 }
  0x24   : > { %436 = sbr.rel (%p433_p13) target bundleno = 924 (0x39c), region = 102  ;;  %s1852_s29 = sshll.u32 (!%p433_p13), %s2111_s19, 4 }
  0x25   : > { %s441_s0 = scalar_lea.vmem (!%p433_p13), [#allocation2], %s1852_s29  ;;  %s483_s20 = scalar_lea.vmem (!%p433_p13), [#allocation3], %s1852_s29 }
  0x26   : > { %s1243_s27 = sshll.u32 (!%p433_p13), %s483_s20, 4  ;;  %s2119_s29 = sand.u32 (!%p433_p13), 1, %s1667_s22   ;;  %s2040_s27 = int_to_ptr.vmem [resolvable:$true] %s1243_s27 }
  0x27   : > { %s2050_s17 = scalar_lea.sflag (!%p433_p13), [#allocation4], %s2119_s29  ;;  %s1607_s24 = scalar_lea.vmem (!%p433_p13), %s2040_s27, 256 }
  0x28   : > { %p1608_p0 = scmp.ne.s32.totalorder (!%p433_p13), %s2040_s27, %s1607_s24  ;;  %s1689_s18 = smov (!%p433_p13), [#allocation3]  }
  0x29   : > { %v1519_v2 = vld [vmem:[%s2098_s2 + $0x74] ss:$8 sps:$4 sm:$0xff]   ;;  %v1521_v3 = vld [vmem:[%s2098_s2 + $0x70] ss:$8 sps:$4 sm:$0xff]   ;;  %v1685_v4 = vmov 0   ;;  %vm537_vm0 = vcmask 1041409   ;;  %v522_v1 = vlaneseq }
  0x2a   : > { %814 = vmatprep.mubr.bf16.mxu1 %v1685_v4  ;;  %616 = vmatprep.mubr.bf16.mxu0 %v1685_v4  ;;  %v1522_v5 = vld [vmem:[%s2098_s2 + $0x64] ss:$8 sps:$4 sm:$0xff]   ;;  %v1524_v6 = vld [vmem:[%s2098_s2 + $0x60] ss:$8 sps:$4 sm:$0xff]   ;;  %v1525_v7 = vld [vmem:[%s2098_s2 + $0x54] ss:$8 sps:$4 sm:$0xff]   ;;  %p1609_p1 = pnand %p1608_p0, %p1797_p5 }
  0x2b   : > { %782 = vmatprep.subr.bf16.mxu1 %v1519_v2  ;;  %v1527_v8 = vld [vmem:[%s2098_s2 + $0x50] ss:$8 sps:$4 sm:$0xff]   ;;  %v1528_v9 = vld [vmem:[%s2098_s2 + $0x44] ss:$8 sps:$4 sm:$0xff]   ;;  %v1530_v10 = vld [vmem:[%s2098_s2 + $0x40] ss:$8 sps:$4 sm:$0xff]  }
  0x2c   : > { %783 = vmatpush1.bf16.msra.mxu1 %v1521_v3  ;;  %v1531_v11 = vld [vmem:[%s2098_s2 + $0x34] ss:$8 sps:$4 sm:$0xff]   ;;  %v1545_v13 = vld [vmem:[%s2106_s10 + $0x30] ss:$8 sps:$4 sm:$0xff]   ;;  %v1546_v14 = vld [vmem:[%s2106_s10 + $0x24] ss:$8 sps:$4 sm:$0xff]   ;;  %p1610_p2 = pneg %p1609_p1 }
  0x2d   : > { %784 = vmatprep.subr.bf16.mxu1 %v1522_v5  ;;  %v1543_v12 = vld [vmem:[%s2106_s10 + $0x34] ss:$8 sps:$4 sm:$0xff]   ;;  %v1533_v15 = vld [vmem:[%s2098_s2 + $0x30] ss:$8 sps:$4 sm:$0xff]   ;;  %v1548_v16 = vld [vmem:[%s2106_s10 + $0x20] ss:$8 sps:$4 sm:$0xff]  }
  0x2e   : > { %592 = vmatprep.subr.bf16.mxu0 %v1543_v12  ;;  %v1534_v17 = vld [vmem:[%s2098_s2 + $0x24] ss:$8 sps:$4 sm:$0xff]   ;;  %v1549_v18 = vld [vmem:[%s2106_s10 + $0x14] ss:$8 sps:$4 sm:$0xff]   ;;  %v494_v19 = vld [vmem:[%s2097_s1] sm:$0x1] }
  0x2f   : > { %593 = vmatpush1.bf16.msra.mxu0 %v1545_v13  ;;  %v1536_v20 = vld [vmem:[%s2098_s2 + $0x20] ss:$8 sps:$4 sm:$0xff]   ;;  %v1551_v21 = vld [vmem:[%s2106_s10 + $0x10] ss:$8 sps:$4 sm:$0xff]   ;;  %v1345_v23 = vmul.f32 -1.442695, %v494_v19 }
  0x30   : > { %785 = vmatpush1.bf16.msra.mxu1 %v1524_v6  ;;  %594 = vmatprep.subr.bf16.mxu0 %v1546_v14  ;;  %v495_v22 = vld [vmem:[%s2097_s1 + $0x1] sm:$0x1]  ;;  %v1537_v24 = vld [vmem:[%s2098_s2 + $0x14] ss:$8 sps:$4 sm:$0xff]   ;;  %v1552_v25 = vld [vmem:[%s2106_s10 + $0x4] ss:$8 sps:$4 sm:$0xff]  }
  0x31   : > { %786 = vmatprep.subr.bf16.mxu1 %v1525_v7  ;;  %v1346_v26 = vmul.f32 -1.442695, %v495_v22  ;;  %1579 = vpow2.f32 %v1345_v23  ;;  %v1539_v27 = vld [vmem:[%s2098_s2 + $0x10] ss:$8 sps:$4 sm:$0xff]   ;;  %v1554_v28 = vld [vmem:[%s2106_s10] ss:$8 sps:$4 sm:$0xff]  }
  0x32   : > { %v1540_v29 = vld [vmem:[%s2098_s2 + $0x4] ss:$8 sps:$4 sm:$0xff]   ;;  %v1542_v30 = vld [vmem:[%s2098_s2] ss:$8 sps:$4 sm:$0xff]   ;;  %vm580_vm1 = vcmask 523264   ;;  %v1555_v49 = vld [vmem:[%s2100_s4 + $0x78] sm:$0xff]  }
  0x33   : > { %595 = vmatpush1.bf16.msra.mxu0 %v1548_v16  ;;  %1581 = vpow2.f32 %v1346_v26  ;;  %v1906_v31 = vld [vmem:[%s441_s0] sm:$0xff]  ;;  %v1908_v32 = vld [vmem:[%s441_s0 + $0x8] sm:$0xff]  ;;  %v1960_v2 = vshrl.u32 %v522_v1, 7  ;;  %vm1687_vm2 = vmmov 0   ;;  %s2045_s0 = scalar_lea.hbm %s2108_s12, %s1403_s28  ;;  %s1611_s15 = sshll.u32 %s1689_s18, 4  ;;  %s1612_s15 = int_to_ptr.vmem [resolvable:$false] %s1611_s15 }
  0x34   : > { %787 = vmatpush1.bf16.msra.mxu1 %v1527_v8  ;;  %596 = vmatprep.subr.bf16.mxu0 %v1549_v18  ;;  %v673_v33 = vpack.c.bf16 %v1908_v32, %v1906_v31  ;;  %v1556_v50 = vld [vmem:[%s2100_s4 + $0x38] sm:$0xff]   ;;  %v1557_v51 = vld [vmem:[%s2100_s4 + $0x70] sm:$0xff]   ;;  %v1559_v53 = vld [vmem:[%s2100_s4 + $0x68] sm:$0xff]   ;;  %s1613_s19 = scalar_lea.vmem %s1612_s15, 512  ;;  %p1614_p3 = scmp.lt.s32.totalorder %s2040_s27, %s1612_s15 }
  0x35   : > { %788 = vmatprep.subr.bf16.mxu1 %v1528_v9  ;;  %v1558_v52 = vld [vmem:[%s2100_s4 + $0x30] sm:$0xff]   ;;  %v1560_v54 = vld [vmem:[%s2100_s4 + $0x28] sm:$0xff]   ;;  %v1561_v55 = vld [vmem:[%s2100_s4 + $0x60] sm:$0xff]   ;;  %v1963_v3 = vsub.s32 0, %v1960_v2  ;;  %v528_v5 = vsub.s32 1, %v1960_v2  ;;  %p1615_p4 = scmp.lt.s32.totalorder %s1613_s19, %s1607_s24 }
  0x36   : > { %v1562_v56 = vld [vmem:[%s2100_s4 + $0x20] sm:$0xff]   ;;  %v1563_v57 = vld [vmem:[%s2100_s4 + $0x58] sm:$0xff]   ;;  %v1565_v59 = vld [vmem:[%s2100_s4 + $0x50] sm:$0xff]  }
  0x37   : > { %597 = vmatpush1.bf16.msra.mxu0 %v1551_v21  ;;  %v1564_v58 = vld [vmem:[%s2100_s4 + $0x18] sm:$0xff]   ;;  %v1566_v60 = vld [vmem:[%s2100_s4 + $0x10] sm:$0xff]   ;;  %v1567_v61 = vld [vmem:[%s2100_s4 + $0x48] sm:$0xff]   ;;  %p1616_p6 = por %p1615_p4, %p1614_p3 }
  0x38   : > { %789 = vmatpush1.bf16.msra.mxu1 %v1530_v10  ;;  %598 = vmatprep.subr.bf16.mxu0 %v1552_v25  ;;  %v1568_v62 = vld [vmem:[%s2100_s4 + $0x8] sm:$0xff]   ;;  %v1569_v63 = vld [vmem:[%s2100_s4 + $0x40] sm:$0xff]  }
  0x39   : > { %790 = vmatprep.subr.bf16.mxu1 %v1531_v11  ;;  %v1570_v0 = vld [vmem:[%s2100_s4] sm:$0xff]   ;;  %v1577_v1 = vld [vmem:[%s2104_s8 + $0x8] sm:$0xff]   ;;  %p1617_p7 = pnand %p1616_p6, %p1610_p2 }
  0x3a   : > { %v690_v4 = vld [vmem:[%s2099_s3] sm:$0x3] }
  0x3b   : > { %599 = vmatpush1.bf16.msra.mxu0 %v1554_v28  ;;  %v695_v6 = vrot.slane %v690_v4, %v1963_v3  ;;  %v699_v7 = vrot.slane %v690_v4, %v528_v5  ;;  %v1973_v25 = vld [vmem:[%s2107_s11] sm:$0x3] }
  0x3c   : > { %791 = vmatpush1.bf16.msra.mxu1 %v1533_v15  ;;  %1406 = vmatprep.subr.bf16.mxu0 %v1555_v49  ;;  %v1578_v4 = vld [vmem:[%s2104_s8] sm:$0xff]  }
  0x3d   : > { %792 = vmatprep.subr.bf16.mxu1 %v1534_v17 }
  0x3e   : > { %v1580_v34 = vpop.eup %1579 }
  0x3f   : > { %v502_v36 = vadd.f32 1.0, %v1580_v34 }
  0x40   : > { %793 = vmatpush1.bf16.msra.mxu1 %v1536_v20  ;;  %v1582_v35 = vpop.eup %1581 }
  0x41   : > { %794 = vmatprep.subr.bf16.mxu1 %v1537_v24  ;;  %v503_v37 = vadd.f32 1.0, %v1582_v35  ;;  %1583 = vrcp.f32 %v502_v36  ;;  %v529_v36 = vrot.slane %v1973_v25, %v528_v5 }
  0x43   : > { %1585 = vrcp.f32 %v503_v37 }
  0x44   : > { %795 = vmatpush1.bf16.msra.mxu1 %v1539_v27 }
  0x45   : > { %796 = vmatprep.subr.bf16.mxu1 %v1540_v29 }
  0x48   : > { %797 = vmatpush1.bf16.msra.mxu1 %v1542_v30 }
  0x4b   : > { %815 = vmatmul.mubr.bf16.vlgmr.msra.gmra.mxu1 %v673_v33 }
  0x4e   : > { %v1584_v38 = vpop.eup %1583 }
  0x4f   : > { %v508_v40 = vmul.f32 %v1584_v38, %v494_v19 }
  0x50   : > { %v1586_v39 = vpop.eup %1585 }
  0x51   : > { %v509_v41 = vmul.f32 %v1586_v39, %v495_v22  ;;  %v510_v42 = vpack.c.bf16 %v508_v40, %v508_v40 }
  0x53   : > { %v511_v43 = vpack.c.bf16 %v509_v41, %v509_v41  ;;  %v534_v44 = vunpack.c.l.b16 %v510_v42 }
  0x55   : > { %v535_v45 = vunpack.c.l.b16 %v511_v43 }
  0x57   : > { %v536_v46 = vrot.slane %v535_v45, 7 }
  0x59   : > { %v538_v47 = vsel %vm537_vm0, %v536_v46, %v534_v44 }
  0x5a   : > { %v539_v48 = vpack.c.b16 %v538_v47, %v538_v47 }
  0x5c   : > { %1355 = vmatmul.mubr.msk.bf16.vlgmr.msra.gmra.mxu0 %vm580_vm1, %v539_v48  ;;  %v1372_v48 = vld [vmem:[%s2101_s5] ss:$0 sm:$0xff] }
  0x5d   : > { %1407 = vmatpush3.bf16.msra.mxu0 %v1556_v50 }
  0x5e   : > { %1408 = vmatprep.subr.bf16.mxu0 %v1557_v51 }
  0x61   : > { %1409 = vmatpush3.bf16.msra.mxu0 %v1558_v52 }
  0x62   : > { %1410 = vmatprep.subr.bf16.mxu0 %v1559_v53 }
  0x65   : > { %1411 = vmatpush3.bf16.msra.mxu0 %v1560_v54 }
  0x66   : > { %1412 = vmatprep.subr.bf16.mxu0 %v1561_v55 }
  0x69   : > { %1413 = vmatpush3.bf16.msra.mxu0 %v1562_v56 }
  0x6a   : > { %1414 = vmatprep.subr.bf16.mxu0 %v1563_v57 }
  0x6d   : > { %1415 = vmatpush3.bf16.msra.mxu0 %v1564_v58  ;;  %v1571_v58 = vld [vmem:[%s2104_s8 + $0x38] sm:$0xff]  }
  0x6e   : > { %1416 = vmatprep.subr.bf16.mxu0 %v1565_v59  ;;  %v1686_v59 = vmov 0.0  }
  0x6f   : > { %1437 = vmatprep.subr.bf16.mxu1 %v1686_v59  ;;  %1453 = vmatprep.mubr.msk.bf16.mxu1 %vm1687_vm2, %v1686_v59 }
  0x70   : > { %1438 = vmatpush3.bf16.msra.mxu1 %v1571_v58 }
  0x71   : > { %1417 = vmatpush3.bf16.msra.mxu0 %v1566_v60  ;;  %v1572_v60 = vld [vmem:[%s2104_s8 + $0x30] sm:$0xff]   ;;  %1439 = vmatprep.subr.bf16.mxu1 %v1686_v59 }
  0x72   : > { %1418 = vmatprep.subr.bf16.mxu0 %v1567_v61  ;;  %v1573_v61 = vld [vmem:[%s2104_s8 + $0x28] sm:$0xff]  }
  0x74   : > { %1440 = vmatpush3.bf16.msra.mxu1 %v1572_v60 }
  0x75   : > { %1419 = vmatpush3.bf16.msra.mxu0 %v1568_v62  ;;  %1441 = vmatprep.subr.bf16.mxu1 %v1686_v59  ;;  %v1574_v62 = vld [vmem:[%s2104_s8 + $0x20] sm:$0xff]  }
  0x76   : > { %1420 = vmatprep.subr.bf16.mxu0 %v1569_v63  ;;  %v1575_v63 = vld [vmem:[%s2104_s8 + $0x18] sm:$0xff]  }
  0x78   : > { %1442 = vmatpush3.bf16.msra.mxu1 %v1573_v61 }
  0x79   : > { %1421 = vmatpush3.bf16.msra.mxu0 %v1570_v0  ;;  %1443 = vmatprep.subr.bf16.mxu1 %v1686_v59  ;;  %v1576_v0 = vld [vmem:[%s2104_s8 + $0x10] sm:$0xff]  }
  0x7c   : > { %1444 = vmatpush3.bf16.msra.mxu1 %v1574_v62 }
  0x7d   : > { %1445 = vmatprep.subr.bf16.mxu1 %v1686_v59 }
  0x80   : > { %1446 = vmatpush3.bf16.msra.mxu1 %v1575_v63 }
  0x81   : > { %1447 = vmatprep.subr.bf16.mxu1 %v1686_v59 }
  0x84   : > { %1448 = vmatpush3.bf16.msra.mxu1 %v1576_v0 }
  0x85   : > { %1449 = vmatprep.subr.bf16.mxu1 %v1686_v59 }
  0x88   : > { %1450 = vmatpush3.bf16.msra.mxu1 %v1577_v1 }
  0x89   : > { %1451 = vmatprep.subr.bf16.mxu1 %v1686_v59 }
  0x8c   : > { %1452 = vmatpush3.bf16.msra.mxu1 %v1578_v4 }
 0x10b   : > { %v816_v8 = vpop.f32.mrf.mxu1 }
 0x10c   : > { %v817_v9 = vadd.f32 %v816_v8, %v695_v6  ;;  %v1688_v8 = vmov 1966171168  }
 0x10d   : > { %v818_v10 = vpop.f32.mrf.mxu1 }
 0x10e   : > { %v819_v11 = vadd.f32 %v818_v10, %v699_v7  ;;  %v829_v12 = vmul.f32 0.70710677, %v817_v9  ;;  %v825_v34 = vmul.f32 0.5, %v817_v9  ;;  %v627_v9 = vunpack.c.l.s4 %v1688_v8 }
 0x10f   : > { %v820_v13 = vpop.f32.mrf.mxu1 }
 0x110   : > { %v830_v14 = vmul.f32 0.70710677, %v819_v11  ;;  %v821_v15 = vadd.f32 %v820_v13, %v695_v6  ;;  %v826_v29 = vmul.f32 0.5, %v819_v11 }
 0x111   : > { %v822_v16 = vpop.f32.mrf.mxu1 }
 0x112   : > { %1587 = verf.f32 %v830_v14  ;;  %v831_v17 = vmul.f32 0.70710677, %v821_v15  ;;  %v823_v18 = vadd.f32 %v822_v16, %v699_v7  ;;  %v827_v28 = vmul.f32 0.5, %v821_v15 }
 0x113   : > { %1589 = verf.f32 %v829_v12  ;;  %v525_v15 = vrot.slane %v1973_v25, %v1963_v3 }
 0x114   : > { %1591 = verf.f32 %v831_v17  ;;  %v832_v19 = vmul.f32 0.70710677, %v823_v18  ;;  %v828_v30 = vmul.f32 0.5, %v823_v18  ;;  %v628_v17 = vunpack.c.0.s8 %v627_v9 }
 0x116   : > { %1593 = verf.f32 %v832_v19 }
 0x11c   : > { %v1976_v39 = vpop.f32.mrf.mxu0 }
 0x11e   : > { %v620_v42 = vpop.f32.mrf.mxu0 }
 0x11f   : > { %v1588_v20 = vpop.eup %1587  ;;  %v1978_v44 = vadd.f32 %v620_v42, %v529_v36 }
 0x120   : > { %v1590_v21 = vpop.eup %1589  ;;  %v838_v23 = vadd.f32 1.0, %v1588_v20  ;;  %v622_v45 = vpop.f32.mrf.mxu0 }
 0x121   : > { %v1592_v22 = vpop.eup %1591  ;;  %v837_v27 = vadd.f32 1.0, %v1590_v21 }
 0x122   : > { %v839_v24 = vadd.f32 1.0, %v1592_v22  ;;  %v842_v37 = vmul.f32 %v838_v23, %v826_v29  ;;  %v623_v46 = vpop.f32.mrf.mxu0  ;;  %v619_v22 = vadd.f32 %v1976_v39, %v525_v15  ;;  %v631_v23 = vsub.s32 %v628_v17, %v1960_v2  ;;  %v1390_v2 = vld [vmem:[%s2103_s7] ss:$0 sm:$0xff] }
 0x123   : > { %v1594_v26 = vpop.eup %1593  ;;  %v841_v40 = vmul.f32 %v837_v27, %v825_v34 }
 0x124   : > { %v840_v33 = vadd.f32 1.0, %v1594_v26  ;;  %v843_v35 = vmul.f32 %v839_v24, %v827_v28  ;;  %v632_v26 = vrot.slane %v619_v22, %v631_v23  ;;  %v657_v29 = vrot.slane %v1978_v44, %v631_v23 }
 0x126   : > { %v844_v38 = vmul.f32 %v840_v33, %v828_v30  ;;  %v845_v43 = vpack.c.bf16 %v843_v35, %v841_v40  ;;  %v633_v27 = vcombine.high %v632_v26, %v632_v26  ;;  %v640_v28 = vrot.slane %v632_v26, %v631_v23  ;;  %v1389_v33 = vld [vmem:[%s2102_s6] ss:$0 sm:$0xff] }
 0x128   : > { %v846_v41 = vpack.c.bf16 %v844_v38, %v842_v37  ;;  %v647_v34 = vrot.slane %v633_v27, %v631_v23  ;;  %v1068_v35 = vadd.f32 1.0, %v640_v28  ;;  %v658_v37 = vcombine.high %v657_v29, %v657_v29 }
 0x129   : > { %v665_v38 = vrot.slane %v657_v29, %v631_v23 }
 0x12a   : > { %1014 = vmatprep.mubr.bf16.mxu0 %v846_v41  ;;  %v1069_v42 = vadd.f32 1.0, %v647_v34  ;;  %v672_v46 = vrot.slane %v658_v37, %v631_v23 }
 0x12b   : > { %1015 = vmatmul.mubr.bf16.vlgmr.msra.gmra.mxu0 %v845_v43  ;;  %v1075_v43 = vrot.slane %v1068_v35, %v1963_v3 }
 0x1eb   : > { %v1422_v47 = vpop.f32.mrf.mxu0 }
 0x1ed   : > { %v1423_v49 = vpop.f32.mrf.mxu0 }
 0x1ee   : > { %v1424_v50 = vadd.f32 %v1423_v49, %v1422_v47  ;;  %v1087_v47 = vrot.slane %v665_v38, %v1963_v3 }
 0x1ef   : > { %v1425_v51 = vpop.f32.mrf.mxu0 }
 0x1f0   : > { %v1983_v52 = vadd.f32 %v1424_v50, %v1372_v48  ;;  %v1079_v50 = vrot.slane %v1069_v42, %v1963_v3 }
 0x1f1   : > { %v1426_v53 = vpop.f32.mrf.mxu0 }
 0x1f2   : > { %v1427_v54 = vadd.f32 %v1426_v53, %v1425_v51  ;;  %1023 = vadd.xlane.f32.xlu0 %v1983_v52  ;;  %v1030_v55 = vmul.f32 %v1983_v52, %v1983_v52  ;;  %v1091_v53 = vrot.slane %v672_v46, %v1963_v3  ;;  %v1393_v3 = vld [vmem:[%s2105_s9] ss:$0 sm:$0xff] }
 0x1f4   : > { %v1988_v56 = vadd.f32 %v1427_v54, %v1372_v48  ;;  %1032 = vadd.xlane.f32.xlu1 %v1030_v55 }
 0x1f6   : > { %1025 = vadd.xlane.f32.xlu0 %v1988_v56  ;;  %v1031_v57 = vmul.f32 %v1988_v56, %v1988_v56 }
 0x1f8   : > { %1034 = vadd.xlane.f32.xlu1 %v1031_v57 }
 0x27b   : > { %v1024_v5 = vpop.xlane.xlu0 %1023 }
 0x27c   : > { %v1028_v6 = vmul.f32 0.0078125, %v1024_v5 }
 0x27d   : > { %v1033_v7 = vpop.xlane.xlu1 %1032 }
 0x27e   : > { %v1040_v10 = vmul.f32 %v1028_v6, %v1028_v6  ;;  %v1036_v11 = vmul.f32 0.0078125, %v1033_v7  ;;  %v1038_v25 = vsub.f32 %v1983_v52, %v1028_v6 }
 0x27f   : > { %v1026_v12 = vpop.xlane.xlu0 %1025 }
 0x280   : > { %v1042_v13 = vsub.f32 %v1036_v11, %v1040_v10  ;;  %v1029_v14 = vmul.f32 0.0078125, %v1026_v12 }
 0x281   : > { %v1035_v16 = vpop.xlane.xlu1 %1034 }
 0x282   : > { %v1044_v18 = vadd.f32 1e-05, %v1042_v13  ;;  %v1041_v19 = vmul.f32 %v1029_v14, %v1029_v14  ;;  %v1037_v20 = vmul.f32 0.0078125, %v1035_v16  ;;  %v1039_v39 = vsub.f32 %v1988_v56, %v1029_v14 }
 0x284   : > { %1595 = vrsqrt.f32 %v1044_v18  ;;  %v1043_v21 = vsub.f32 %v1037_v20, %v1041_v19 }
 0x286   : > { %v1045_v24 = vadd.f32 1e-05, %v1043_v21 }
 0x288   : > { %1597 = vrsqrt.f32 %v1045_v24 }
 0x291   : > { %v1596_v30 = vpop.eup %1595 }
 0x292   : > { %v1048_v36 = vmul.f32 %v1596_v30, %v1038_v25 }
 0x294   : > { %v1057_v40 = vmul.f32 %v1389_v33, %v1048_v36 }
 0x295   : > { %v1598_v41 = vpop.eup %1597 }
 0x296   : > { %v1049_v44 = vmul.f32 %v1598_v41, %v1039_v39  ;;  %v1066_v45 = vadd.f32 %v1390_v2, %v1057_v40 }
 0x298   : > { %v1058_v48 = vmul.f32 %v1389_v33, %v1049_v44  ;;  %v1082_v49 = vmul.f32 %v1075_v43, %v1066_v45 }
 0x29a   : > { %v1067_v51 = vadd.f32 %v1390_v2, %v1058_v48  ;;  %v1094_v52 = vadd.f32 %v1087_v47, %v1082_v49 }
 0x29c   : > { %v1083_v54 = vmul.f32 %v1079_v50, %v1067_v51  ;;  %v1391_v55 = vmul.f32 -1.442695, %v1094_v52 }
 0x29e   : > { %v1095_v56 = vadd.f32 %v1091_v53, %v1083_v54  ;;  %1599 = vpow2.f32 %v1391_v55 }
 0x2a0   : > { %v1392_v57 = vmul.f32 -1.442695, %v1095_v56 }
 0x2a2   : > { %1601 = vpow2.f32 %v1392_v57 }
 0x2ab   : > { %v1600_v58 = vpop.eup %1599 }
 0x2ac   : > { %v1102_v59 = vadd.f32 1.0, %v1600_v58 }
 0x2ae   : > { %1603 = vrcp.f32 %v1102_v59 }
 0x2af   : > { %v1602_v60 = vpop.eup %1601 }
 0x2b0   : > { %v1103_v61 = vadd.f32 1.0, %v1602_v60 }
 0x2b2   : > { %1605 = vrcp.f32 %v1103_v61 }
 0x2bb   : > { %v1604_v62 = vpop.eup %1603 }
 0x2bc   : > { %v1108_v0 = vmul.f32 %v1604_v62, %v1094_v52 }
 0x2bf   : > { %v1606_v63 = vpop.eup %1605 }
 0x2c0   : > { %v1109_v1 = vmul.f32 %v1606_v63, %v1095_v56 }
 0x2c2   : > { %v1110_v4 = vpack.c.bf16 %v1109_v1, %v1108_v0 }
 0x2c4   : > { %1454 = vmatmul.mubr.bf16.vlgmr.msra.gmra.mxu1 %v1110_v4 }
 0x384   : > { %v1216_v5 = vpop.f32.mrf.mxu1 }
 0x385   : > { %v1217_v6 = vadd.f32 %v1393_v3, %v1216_v5 }
 0x386   : > { %v1455_v7 = vpop.f32.mrf.mxu1 }
 0x387   : > { %v1223_v8 = vadd.f32 %v1217_v6, %v1906_v31 }
 0x388   : > { %v1219_v9 = vpop.f32.mrf.mxu1 }
 0x389   : > { %1225 = vst [vmem:[%s483_s20] sm:$0xff] %v1223_v8  ;;  %v1220_v10 = vadd.f32 %v1393_v3, %v1219_v9 }
 0x38a   : > { %v1456_v11 = vpop.f32.mrf.mxu1 }
 0x38b   : > { %v1224_v12 = vadd.f32 %v1220_v10, %v1908_v32 }
 0x38d   : > { %1226 = vst [vmem:[%s483_s20 + $0x8] sm:$0xff] %v1224_v12 }
 0x38e   : > { %1620 = shalt.err (!%p1617_p7)
}
 0x38f   : > { %s1621_s25 = scalar_lea.hbm %s2045_s0, 256  ;;  %s1625_s30 = scalar_lea.hbm %s2108_s12, 512 }
 0x390   : > { %p1622_p8 = scmp.ne.s32.totalorder %s2045_s0, %s1621_s25  ;;  %p1626_p13 = scmp.lt.s32.totalorder %s2045_s0, %s2108_s12 }
 0x391   : > { %p1627_p0 = scmp.lt.s32.totalorder %s1625_s30, %s1621_s25 }
 0x392   : > { %p1623_p11 = pnand %p1622_p8, %p1797_p5 }
 0x393   : > { %p1628_p1 = por %p1627_p0, %p1626_p13 }
 0x394   : > { %p1624_p12 = pneg %p1623_p11 }
 0x396   : > { %p1629_p2 = pnand %p1628_p1, %p1624_p12 }
 0x398   : > { %1632 = shalt.err (!%p1629_p2)
}
 0x399   : > { %s1690_s24 = smov 128   ;;  %s1691_s18 = smov 256  }
 0x39a   : > { %s1692_s15 = smov 8  }
 0x39b   : > { %1457 = dma.vmem_to_hbm [thread:$0]  (%p1797_p5), %s2040_s27, 256, %s2045_s0, %s2050_s17, %s1690_s24, %s1691_s18, %s1692_s15  }
 0x39c PF: > { %s1258_s19 = sand.u32 1, %s1663_s21   ;;  %p1460_p3 = pnand %p1339_p10, %p1808_p9 }
 0x39d   : > { %s1259_s25 = scalar_lea.sflag [#allocation4], %s1258_s19 }
 0x39e   : > { %p1461_p4 = pneg %p1460_p3 }
 0x3a0   : > { %1658 = dma.done.wait (%p1461_p4), %s1259_s25, 256  }
 0x3a1   : > { %1660 = vsyncadd (%p1461_p4), %s1259_s25, 4294967040  ;;  %s25_s26 = sadd.s32 1, %s1683_s26   ;;  %s2120_s20 = sld [smem:[#allocation8_spill]] }
 0x3a2   : > { %p22_p6 = scmp.ge.s32.totalorder %s25_s26, 4   ;;  %s2121_s24 = sld [smem:[#allocation6_spill]] }
 0x3a3   : > { %s2122_s25 = sld [smem:[#allocation7_spill]]  ;;  %s2123_s21 = smov %s1667_s22 }
 0x3a4   : > { %s2124_s22 = smov %s1671_s23  ;;  %24 = sbr.rel (!%p22_p6) target bundleno = 6 (0x6), region = 149 }
 0x3a7   : > { %s2125_s23 = smov %s2120_s20 }
 0x3a9   :  { %1264 = vsyncpa [#allocation4], 1 }
 0x3aa   :  { %1266 = vsyncpa [#allocation4 + $0x1], 1 }

</bundles_post_ra>
